<compile_context>
chip_gen: v7x
topology: tpu7x:2x2x1
jax: 0.10.0
libtpu: 0.0.40
codegen_flags: <defaults>
</compile_context>

<pallas_src>
import math

import jax
import jax.numpy as jnp
from jax.experimental import pallas as pl
from jax.experimental.pallas import tpu as pltpu


# ------------------------------ Pallas kernel --------------------------------

def _mish(x):
    """mish(x) = x * tanh(softplus(x)) = x * t/(t+2) with t = e^x (e^x + 2).

    Evaluated with u = exp(-|x|) so the exponential never overflows:
      x >= 0: tanh(sp) = (1 + 2u) / (1 + 2u + 2u^2)
      x <  0: tanh(sp) = u(u + 2) / (u(u + 2) + 2)
    One EUP exp + one approximate reciprocal (both off the VALU critical slot).
    """
    u = jnp.exp(-jnp.abs(x))
    pos = x >= 0
    num = jnp.where(pos, 1.0 + 2.0 * u, u * (u + 2.0))
    den = jnp.where(pos, 1.0 + 2.0 * u + 2.0 * u * u, u * (u + 2.0) + 2.0)
    return x * num * pl.reciprocal(den, approx=True)


def _make_fused_kernel(n_layers, n_mish):
    """Whole forward in one kernel: n_layers folded matmuls, Mish after the first n_mish."""

    def kernel(*refs):
        x_ref = refs[0]
        layer_refs = refs[1:1 + 2 * n_layers]          # (T_0, shift_0, T_1, shift_1, ...)
        o_ref = refs[1 + 2 * n_layers]

        a = x_ref[...]                                 # (B, Cin*H*W) f32, on-chip throughout
        for l in range(n_layers):
            t_ref = layer_refs[2 * l]
            s_ref = layer_refs[2 * l + 1]
            # conv (+ bias + folded eval-BatchNorm [+ FC on the last layer]) as one MXU matmul;
            # bf16 operands, f32 accumulation and epilogue.
            a = jnp.dot(a.astype(jnp.bfloat16), t_ref[...],
                        preferred_element_type=jnp.float32) + s_ref[...]
            if l < n_mish:
                a = _mish(a)
        o_ref[...] = a.astype(o_ref.dtype)

    return kernel


def fused_forward(x_flat, mats, shifts):
    """x_flat: (B, Cin*H*W) f32, NCHW-flattened.  Returns (B, z_dims) f32."""
    b = x_flat.shape[0]
    z = mats[-1].shape[1]
    args = [x_flat]
    for t, s in zip(mats, shifts):
        args += [t, s]

    kernel = _make_fused_kernel(n_layers=len(mats), n_mish=len(mats) - 1)
    return pl.pallas_call(
        kernel,
        out_shape=jax.ShapeDtypeStruct((b, z), jnp.float32),
        grid=(1,),
        in_specs=[pl.BlockSpec(a.shape, lambda i: (0, 0)) for a in args],
        out_specs=pl.BlockSpec((b, z), lambda i: (0, 0)),
        compiler_params=pltpu.CompilerParams(dimension_semantics=("arbitrary",)),
    )(*args)


@jax.jit
def feat_map_to_latent_via_fc(x_nchw, folded):
    """Full forward.  x: (N, nc_in, H, W) NCHW f32 -> (N, z_dims) f32."""
    mats, shifts = folded
    b = x_nchw.shape[0]
    # reshape of a contiguous NCHW tensor == torch row-major flatten; no transpose anywhere.
    return fused_forward(x_nchw.reshape(b, -1), mats, shifts)


# ------------------ one-time parameter folding (plain JAX, input-independent) ------------------

def _conv3x3_as_dense(w, stride, h_in, w_in):
    """Fold a 3x3 / pad-1 conv into a dense matrix T so that, for NCHW-flattened x,
    (x.reshape(B,-1) @ T).reshape(B, Cout, Ho, Wo) == conv2d(x, w, stride=stride, pad=1)."""
    c_in = w.shape[1]
    c_out = w.shape[0]
    h_out = (h_in + 2 - 3) // stride + 1
    w_out = (w_in + 2 - 3) // stride + 1
    k = jnp.arange(3)
    # sel_h[kh, hi, ho] = 1 iff hi == stride*ho + kh - 1  (out-of-bounds never matches -> pad=0)
    sel_h = (jnp.arange(h_in)[None, :, None] ==
             (stride * jnp.arange(h_out)[None, None, :] + k[:, None, None] - 1)).astype(jnp.float32)
    sel_w = (jnp.arange(w_in)[None, :, None] ==
             (stride * jnp.arange(w_out)[None, None, :] + k[:, None, None] - 1)).astype(jnp.float32)
    t = jnp.einsum('ocij,ihp,jyq->chyopq', w, sel_h, sel_w)   # (Cin, Hi, Wi, Cout, Ho, Wo)
    return t.reshape(c_in * h_in * w_in, c_out * h_out * w_out), h_out, w_out


def fold_params(params, nc_in, input_imsize):
    """Fold conv weights + eval-BatchNorm + biases (and the final conv + FC pair) into dense
    matmul operands.  One-time, input-independent."""
    h = w = input_imsize
    mats, shifts = [], []
    for p in params["down"]:
        c_out = p["w"].shape[0]
        t, h, w = _conv3x3_as_dense(p["w"], 2, h, w)
        scale = p["bn_scale"]
        shift = p["b"] * scale + p["bn_shift"]
        t = (t.reshape(-1, c_out, h * w) * scale[None, :, None]).reshape(-1, c_out * h * w)
        mats.append(t.astype(jnp.bfloat16))
        shifts.append(jnp.repeat(shift, h * w)[None, :].astype(jnp.float32))

    # Final conv (no norm, no activation) folded together with the linear FC into ONE matmul:
    #   (x @ T3 + s3) @ Wfc + bfc == x @ (T3 @ Wfc) + (s3 @ Wfc + bfc)
    p = params["final_conv"]
    c_out = p["w"].shape[0]
    t3, h, w = _conv3x3_as_dense(p["w"], 1, h, w)             # f32, (prev_flat, c_out*h*w)
    s3 = jnp.repeat(p["b"], h * w)                            # (c_out*h*w,)
    fan_in = c_out * h * w
    # StyleGAN2 FullyConnectedLayer runtime weight gain; conv3 output flat order is already
    # torch-NCHW, so no column permutation is needed before the FC.
    wfc = params["fc_w"].T * (1.0 / math.sqrt(fan_in))        # (fan_in, z_dims) f32
    mats.append((t3 @ wfc).astype(jnp.bfloat16))              # (prev_flat, z_dims)
    shifts.append((s3 @ wfc + params["fc_b"])[None, :].astype(jnp.float32))
    return tuple(mats), tuple(shifts)


# --------------------------- deterministic parameters ---------------------------

def make_params(key, nc_in, z_dims, input_imsize, smallest_imsize, eps=1e-5):
    n_down = int(round(math.log2(input_imsize) - math.log2(smallest_imsize)))
    params = {"down": []}
    nc = nc_in
    for _ in range(n_down):
        next_nc = min(z_dims, nc * 2)
        key, k1, k2, k3, k4, k5, k6 = jax.random.split(key, 7)
        w = 0.1 * jax.random.normal(k1, (next_nc, nc, 3, 3), jnp.float32)
        b = 0.1 * jax.random.normal(k2, (next_nc,), jnp.float32)
        gamma = 1.0 + 0.05 * jax.random.normal(k3, (next_nc,), jnp.float32)
        beta = 0.05 * jax.random.normal(k4, (next_nc,), jnp.float32)
        running_mean = 0.05 * jax.random.normal(k5, (next_nc,), jnp.float32)
        running_var = 1.0 + 0.05 * jax.random.uniform(k6, (next_nc,), jnp.float32)
        bn_scale = gamma / jnp.sqrt(running_var + eps)      # folded eval-mode BatchNorm
        bn_shift = beta - running_mean * bn_scale
        params["down"].append(dict(w=w, b=b, bn_scale=bn_scale, bn_shift=bn_shift))
        nc = next_nc
    key, k1, k2 = jax.random.split(key, 3)
    params["final_conv"] = dict(
        w=0.1 * jax.random.normal(k1, (z_dims, nc, 3, 3), jnp.float32),
        b=0.1 * jax.random.normal(k2, (z_dims,), jnp.float32),
    )
    key, k1, k2 = jax.random.split(key, 3)
    fc_in = z_dims * smallest_imsize ** 2
    params["fc_w"] = jax.random.normal(k1, (z_dims, fc_in), jnp.float32)   # torch layout (out, in)
    params["fc_b"] = 0.1 * jax.random.normal(k2, (z_dims,), jnp.float32)
    return params


# ------------------- pure-JAX reference (original module semantics) -------------------

def reference_forward(x, params):
    dn = ("NCHW", "OIHW", "NCHW")
    a = x
    for p in params["down"]:
        a = jax.lax.conv_general_dilated(a, p["w"], (2, 2), ((1, 1), (1, 1)),
                                         dimension_numbers=dn)
        a = a + p["b"][None, :, None, None]
        a = a * p["bn_scale"][None, :, None, None] + p["bn_shift"][None, :, None, None]
        a = a * jnp.tanh(jax.nn.softplus(a))                      # exact Mish
    p = params["final_conv"]
    a = jax.lax.conv_general_dilated(a, p["w"], (1, 1), ((1, 1), (1, 1)),
                                     dimension_numbers=dn)
    a = a + p["b"][None, :, None, None]
    a = a.reshape(a.shape[0], -1)                                  # torch Flatten (NCHW order)
    fan_in = a.shape[1]
    return a @ (params["fc_w"].T / math.sqrt(fan_in)) + params["fc_b"]


# ------------------------------------- main -------------------------------------

if __name__ == "__main__":
    INPUT_IMSIZE = 16
    SMALLEST_IMSIZE = 4
    NC_IN = 4
    Z_DIMS = 32
    BATCH = 2

    key = jax.random.PRNGKey(0)
    key, kx = jax.random.split(key)
    x = jax.random.normal(kx, (BATCH, NC_IN, INPUT_IMSIZE, INPUT_IMSIZE), jnp.float32)  # NCHW

    params = make_params(key, NC_IN, Z_DIMS, INPUT_IMSIZE, SMALLEST_IMSIZE)
    folded = fold_params(params, NC_IN, INPUT_IMSIZE)   # one-time, input-independent folding
    folded = jax.block_until_ready(folded)

    out = feat_map_to_latent_via_fc(x, folded)
    out = jax.block_until_ready(out)
    assert out.shape == (BATCH, Z_DIMS), out.shape
    assert out.dtype == jnp.float32
    assert bool(jnp.isfinite(out).all())

    # Correctness vs. the original (f32, unfolded) module semantics; bf16 weights + approx
    # reciprocal in Mish account for the small tolerance.
    ref = jax.block_until_ready(reference_forward(x, params))
    max_err = float(jnp.max(jnp.abs(out - ref)))
    assert max_err < 5e-2, f"max abs error vs reference: {max_err}"

    print("KERNEL_OK")
</pallas_src>

<mosaic_0001>
module attributes {stable_mosaic.version = 11 : i64} {
  func.func @kernel(%arg0: i32, %arg1: memref<2x1024xf32, #tpu.memory_space<vmem>>, %arg2: memref<1024x512xbf16, #tpu.memory_space<vmem>>, %arg3: memref<1x512xf32, #tpu.memory_space<vmem>>, %arg4: memref<512x256xbf16, #tpu.memory_space<vmem>>, %arg5: memref<1x256xf32, #tpu.memory_space<vmem>>, %arg6: memref<256x32xbf16, #tpu.memory_space<vmem>>, %arg7: memref<1x32xf32, #tpu.memory_space<vmem>>, %arg8: memref<2x32xf32, #tpu.memory_space<vmem>>) attributes {dimension_semantics = [#tpu.dimension_semantics<arbitrary>], iteration_bounds = array<i64: 1>, scalar_prefetch = 0 : i64, scratch_operands = 0 : i64, tpu.core_type = #tpu.core_type<tc>, window_params = [{pipeline_mode = #tpu.pipeline_mode<synchronous>, transform_indices = @transform_0, window_bounds = array<i64: 2, 1024>}, {pipeline_mode = #tpu.pipeline_mode<synchronous>, transform_indices = @transform_1, window_bounds = array<i64: 1024, 512>}, {pipeline_mode = #tpu.pipeline_mode<synchronous>, transform_indices = @transform_2, window_bounds = array<i64: 1, 512>}, {pipeline_mode = #tpu.pipeline_mode<synchronous>, transform_indices = @transform_3, window_bounds = array<i64: 512, 256>}, {pipeline_mode = #tpu.pipeline_mode<synchronous>, transform_indices = @transform_4, window_bounds = array<i64: 1, 256>}, {pipeline_mode = #tpu.pipeline_mode<synchronous>, transform_indices = @transform_5, window_bounds = array<i64: 256, 32>}, {pipeline_mode = #tpu.pipeline_mode<synchronous>, transform_indices = @transform_6, window_bounds = array<i64: 1, 32>}, {pipeline_mode = #tpu.pipeline_mode<synchronous>, transform_indices = @transform_7, window_bounds = array<i64: 2, 32>}]} {
    %c0 = arith.constant 0 : index
    %c0_0 = arith.constant 0 : index
    %0 = vector.load %arg1[%c0, %c0_0] : memref<2x1024xf32, #tpu.memory_space<vmem>>, vector<2x1024xf32>
    %1 = arith.truncf %0 : vector<2x1024xf32> to vector<2x1024xbf16>
    %c0_1 = arith.constant 0 : index
    %c0_2 = arith.constant 0 : index
    %2 = vector.load %arg2[%c0_1, %c0_2] : memref<1024x512xbf16, #tpu.memory_space<vmem>>, vector<1024x512xbf16>
    %cst = arith.constant dense<0.000000e+00> : vector<2x512xf32>
    %3 = tpu.matmul %1, %2, %cst {dimension_numbers = #tpu.dot_dimension_numbers<[1], [0], [0], [1], [0, 0, 1, 1], [], []>} : vector<2x1024xbf16>, vector<1024x512xbf16>, vector<2x512xf32> -> vector<2x512xf32>
    %c0_3 = arith.constant 0 : index
    %c0_4 = arith.constant 0 : index
    %4 = vector.load %arg3[%c0_3, %c0_4] : memref<1x512xf32, #tpu.memory_space<vmem>>, vector<1x512xf32>
    %5 = vector.broadcast %4 : vector<1x512xf32> to vector<2x512xf32>
    %6 = arith.addf %3, %5 : vector<2x512xf32>
    %7 = math.absf %6 : vector<2x512xf32>
    %cst_5 = arith.constant 0.000000e+00 : f32
    %8 = vector.broadcast %cst_5 : f32 to vector<2x512xf32>
    %9 = arith.subf %8, %7 : vector<2x512xf32>
    %10 = math.exp %9 : vector<2x512xf32>
    %cst_6 = arith.constant 0.000000e+00 : f32
    %11 = vector.broadcast %cst_6 : f32 to vector<2x512xf32>
    %12 = arith.cmpf oge, %6, %11 : vector<2x512xf32>
    %cst_7 = arith.constant 2.000000e+00 : f32
    %13 = vector.broadcast %cst_7 : f32 to vector<2x512xf32>
    %14 = arith.mulf %13, %10 : vector<2x512xf32>
    %cst_8 = arith.constant 1.000000e+00 : f32
    %15 = vector.broadcast %cst_8 : f32 to vector<2x512xf32>
    %16 = arith.addf %15, %14 : vector<2x512xf32>
    %cst_9 = arith.constant 2.000000e+00 : f32
    %17 = vector.broadcast %cst_9 : f32 to vector<2x512xf32>
    %18 = arith.addf %10, %17 : vector<2x512xf32>
    %19 = arith.mulf %10, %18 : vector<2x512xf32>
    %20 = arith.select %12, %16, %19 : vector<2x512xi1>, vector<2x512xf32>
    %cst_10 = arith.constant 2.000000e+00 : f32
    %21 = vector.broadcast %cst_10 : f32 to vector<2x512xf32>
    %22 = arith.mulf %21, %10 : vector<2x512xf32>
    %cst_11 = arith.constant 1.000000e+00 : f32
    %23 = vector.broadcast %cst_11 : f32 to vector<2x512xf32>
    %24 = arith.addf %23, %22 : vector<2x512xf32>
    %cst_12 = arith.constant 2.000000e+00 : f32
    %25 = vector.broadcast %cst_12 : f32 to vector<2x512xf32>
    %26 = arith.mulf %25, %10 : vector<2x512xf32>
    %27 = arith.mulf %26, %10 : vector<2x512xf32>
    %28 = arith.addf %24, %27 : vector<2x512xf32>
    %cst_13 = arith.constant 2.000000e+00 : f32
    %29 = vector.broadcast %cst_13 : f32 to vector<2x512xf32>
    %30 = arith.addf %10, %29 : vector<2x512xf32>
    %31 = arith.mulf %10, %30 : vector<2x512xf32>
    %cst_14 = arith.constant 2.000000e+00 : f32
    %32 = vector.broadcast %cst_14 : f32 to vector<2x512xf32>
    %33 = arith.addf %31, %32 : vector<2x512xf32>
    %34 = arith.select %12, %28, %33 : vector<2x512xi1>, vector<2x512xf32>
    %35 = arith.mulf %6, %20 : vector<2x512xf32>
    %36 = tpu.reciprocal %34 {approx = true} : vector<2x512xf32> -> vector<2x512xf32>
    %37 = arith.mulf %35, %36 : vector<2x512xf32>
    %38 = arith.truncf %37 : vector<2x512xf32> to vector<2x512xbf16>
    %c0_15 = arith.constant 0 : index
    %c0_16 = arith.constant 0 : index
    %39 = vector.load %arg4[%c0_15, %c0_16] : memref<512x256xbf16, #tpu.memory_space<vmem>>, vector<512x256xbf16>
    %cst_17 = arith.constant dense<0.000000e+00> : vector<2x256xf32>
    %40 = tpu.matmul %38, %39, %cst_17 {dimension_numbers = #tpu.dot_dimension_numbers<[1], [0], [0], [1], [0, 0, 1, 1], [], []>} : vector<2x512xbf16>, vector<512x256xbf16>, vector<2x256xf32> -> vector<2x256xf32>
    %c0_18 = arith.constant 0 : index
    %c0_19 = arith.constant 0 : index
    %41 = vector.load %arg5[%c0_18, %c0_19] : memref<1x256xf32, #tpu.memory_space<vmem>>, vector<1x256xf32>
    %42 = vector.broadcast %41 : vector<1x256xf32> to vector<2x256xf32>
    %43 = arith.addf %40, %42 : vector<2x256xf32>
    %44 = math.absf %43 : vector<2x256xf32>
    %cst_20 = arith.constant 0.000000e+00 : f32
    %45 = vector.broadcast %cst_20 : f32 to vector<2x256xf32>
    %46 = arith.subf %45, %44 : vector<2x256xf32>
    %47 = math.exp %46 : vector<2x256xf32>
    %cst_21 = arith.constant 0.000000e+00 : f32
    %48 = vector.broadcast %cst_21 : f32 to vector<2x256xf32>
    %49 = arith.cmpf oge, %43, %48 : vector<2x256xf32>
    %cst_22 = arith.constant 2.000000e+00 : f32
    %50 = vector.broadcast %cst_22 : f32 to vector<2x256xf32>
    %51 = arith.mulf %50, %47 : vector<2x256xf32>
    %cst_23 = arith.constant 1.000000e+00 : f32
    %52 = vector.broadcast %cst_23 : f32 to vector<2x256xf32>
    %53 = arith.addf %52, %51 : vector<2x256xf32>
    %cst_24 = arith.constant 2.000000e+00 : f32
    %54 = vector.broadcast %cst_24 : f32 to vector<2x256xf32>
    %55 = arith.addf %47, %54 : vector<2x256xf32>
    %56 = arith.mulf %47, %55 : vector<2x256xf32>
    %57 = arith.select %49, %53, %56 : vector<2x256xi1>, vector<2x256xf32>
    %cst_25 = arith.constant 2.000000e+00 : f32
    %58 = vector.broadcast %cst_25 : f32 to vector<2x256xf32>
    %59 = arith.mulf %58, %47 : vector<2x256xf32>
    %cst_26 = arith.constant 1.000000e+00 : f32
    %60 = vector.broadcast %cst_26 : f32 to vector<2x256xf32>
    %61 = arith.addf %60, %59 : vector<2x256xf32>
    %cst_27 = arith.constant 2.000000e+00 : f32
    %62 = vector.broadcast %cst_27 : f32 to vector<2x256xf32>
    %63 = arith.mulf %62, %47 : vector<2x256xf32>
    %64 = arith.mulf %63, %47 : vector<2x256xf32>
    %65 = arith.addf %61, %64 : vector<2x256xf32>
    %cst_28 = arith.constant 2.000000e+00 : f32
    %66 = vector.broadcast %cst_28 : f32 to vector<2x256xf32>
    %67 = arith.addf %47, %66 : vector<2x256xf32>
    %68 = arith.mulf %47, %67 : vector<2x256xf32>
    %cst_29 = arith.constant 2.000000e+00 : f32
    %69 = vector.broadcast %cst_29 : f32 to vector<2x256xf32>
    %70 = arith.addf %68, %69 : vector<2x256xf32>
    %71 = arith.select %49, %65, %70 : vector<2x256xi1>, vector<2x256xf32>
    %72 = arith.mulf %43, %57 : vector<2x256xf32>
    %73 = tpu.reciprocal %71 {approx = true} : vector<2x256xf32> -> vector<2x256xf32>
    %74 = arith.mulf %72, %73 : vector<2x256xf32>
    %75 = arith.truncf %74 : vector<2x256xf32> to vector<2x256xbf16>
    %c0_30 = arith.constant 0 : index
    %c0_31 = arith.constant 0 : index
    %76 = vector.load %arg6[%c0_30, %c0_31] : memref<256x32xbf16, #tpu.memory_space<vmem>>, vector<256x32xbf16>
    %cst_32 = arith.constant dense<0.000000e+00> : vector<2x32xf32>
    %77 = tpu.matmul %75, %76, %cst_32 {dimension_numbers = #tpu.dot_dimension_numbers<[1], [0], [0], [1], [0, 0, 1, 1], [], []>} : vector<2x256xbf16>, vector<256x32xbf16>, vector<2x32xf32> -> vector<2x32xf32>
    %c0_33 = arith.constant 0 : index
    %c0_34 = arith.constant 0 : index
    %78 = vector.load %arg7[%c0_33, %c0_34] : memref<1x32xf32, #tpu.memory_space<vmem>>, vector<1x32xf32>
    %79 = vector.broadcast %78 : vector<1x32xf32> to vector<2x32xf32>
    %80 = arith.addf %77, %79 : vector<2x32xf32>
    %c0_35 = arith.constant 0 : index
    %c0_36 = arith.constant 0 : index
    %81 = vector.load %arg8[%c0_35, %c0_36] : memref<2x32xf32, #tpu.memory_space<vmem>>, vector<2x32xf32>
    tpu.vector_store %arg8[%c0_35, %c0_36], %80 {strides = array<i32>} : memref<2x32xf32, #tpu.memory_space<vmem>>, vector<2x32xf32>,
    return
  }
  func.func @transform_0(%arg0: i32) -> (i32, i32) {
    %c0_i32 = arith.constant 0 : i32
    %c0_i32_0 = arith.constant 0 : i32
    %c0_i32_1 = arith.constant 0 : i32
    return %c0_i32, %c0_i32_0 : i32, i32
  }
  func.func @transform_1(%arg0: i32) -> (i32, i32) {
    %c0_i32 = arith.constant 0 : i32
    %c0_i32_0 = arith.constant 0 : i32
    %c0_i32_1 = arith.constant 0 : i32
    return %c0_i32, %c0_i32_0 : i32, i32
  }
  func.func @transform_2(%arg0: i32) -> (i32, i32) {
    %c0_i32 = arith.constant 0 : i32
    %c0_i32_0 = arith.constant 0 : i32
    %c0_i32_1 = arith.constant 0 : i32
    return %c0_i32, %c0_i32_0 : i32, i32
  }
  func.func @transform_3(%arg0: i32) -> (i32, i32) {
    %c0_i32 = arith.constant 0 : i32
    %c0_i32_0 = arith.constant 0 : i32
    %c0_i32_1 = arith.constant 0 : i32
    return %c0_i32, %c0_i32_0 : i32, i32
  }
  func.func @transform_4(%arg0: i32) -> (i32, i32) {
    %c0_i32 = arith.constant 0 : i32
    %c0_i32_0 = arith.constant 0 : i32
    %c0_i32_1 = arith.constant 0 : i32
    return %c0_i32, %c0_i32_0 : i32, i32
  }
  func.func @transform_5(%arg0: i32) -> (i32, i32) {
    %c0_i32 = arith.constant 0 : i32
    %c0_i32_0 = arith.constant 0 : i32
    %c0_i32_1 = arith.constant 0 : i32
    return %c0_i32, %c0_i32_0 : i32, i32
  }
  func.func @transform_6(%arg0: i32) -> (i32, i32) {
    %c0_i32 = arith.constant 0 : i32
    %c0_i32_0 = arith.constant 0 : i32
    %c0_i32_1 = arith.constant 0 : i32
    return %c0_i32, %c0_i32_0 : i32, i32
  }
  func.func @transform_7(%arg0: i32) -> (i32, i32) {
    %c0_i32 = arith.constant 0 : i32
    %c0_i32_0 = arith.constant 0 : i32
    %c0_i32_1 = arith.constant 0 : i32
    return %c0_i32, %c0_i32_0 : i32, i32
  }
}

</mosaic_0001>

<bundles_post_ra>
// kernel: feat_map_to_latent_via_fc.1
= control target key start
LH: loop header
LB: loop body
LE: loop exit
PB: predicated region body
PF: predicated region fallthrough
CT: control target
= control target key end

     0   :  { %12 = vsyncpa [#allocation3], 0  ;;  %s3993_s0 = inlined_call_operand.vmem [shape: f32[2,1024], index: 0, kind: input, shape index: {}]   ;;  %s3994_s1 = inlined_call_operand.hbm [shape: bf16[1024,512], index: 1, kind: input, shape index: {}]   ;;  %s3995_s2 = inlined_call_operand.vmem [shape: f32[1,512], index: 2, kind: input, shape index: {}]   ;;  %s3996_s3 = inlined_call_operand.hbm [shape: bf16[512,256], index: 3, kind: input, shape index: {}]   ;;  %s3997_s4 = inlined_call_operand.vmem [shape: f32[1,256], index: 4, kind: input, shape index: {}]   ;;  %s3998_s5 = inlined_call_operand.vmem [shape: bf16[256,32], index: 5, kind: input, shape index: {}]   ;;  %s3999_s6 = inlined_call_operand.vmem [shape: f32[1,32], index: 6, kind: input, shape index: {}]   ;;  %s4000_s7 = inlined_call_operand.hbm [shape: f32[2,32], index: 7, kind: output, shape index: {}]  }
   0x1   :  { %13 = vsyncpa [#allocation6], 0 }
   0x2   :  { %14 = vsyncpa [#allocation4], 0  ;;  %s3768_s24 = smov [#allocation2]   ;;  %s3696_s28 = scalar_lea.hbm %s3994_s1, 32768 }
   0x3   :  { %s22_s25 = sshll.u32 %s3768_s24, 4  ;;  %p3697_p0 = scmp.ne.s32.totalorder %s3994_s1, %s3696_s28  ;;  %s23_s25 = int_to_ptr.vmem [resolvable:$true] %s22_s25 }
   0x4   :  { %p3700_p1 = scmp.lt.u32.totalorder %s3696_s28, %s3994_s1 }
   0x6   :  { %p3702_p2 = pnand %p3700_p1, %p3697_p0 }
   0x8   :  { %3705 = shalt.err (!%p3702_p2)
}
   0x9   :  { %s3706_s10 = scalar_lea.vmem %s23_s25, 32768  ;;  %p3711_p4 = scmp.lt.s32.totalorder %s23_s25, %s23_s25 }
   0xa   :  { %p3707_p3 = scmp.ne.s32.totalorder %s23_s25, %s3706_s10  ;;  %p3712_p5 = scmp.lt.s32.totalorder %s3706_s10, %s3706_s10 }
   0xc   :  { %p3713_p6 = por %p3712_p5, %p3711_p4 }
   0xe   :  { %p3714_p7 = pnand %p3713_p6, %p3707_p3 }
  0x10   :  { %3717 = shalt.err (!%p3714_p7)
}
  0x11   :  { %s3769_s11 = smov 256   ;;  %s3770_s12 = smov 16  }
  0x12   :  { %28 = dma.hbm_to_vmem [thread:$0]  %s3994_s1, 32768, %s23_s25, [#allocation3], %s3769_s11, %s3769_s11, %s3770_s12  }
  0x13   :  { %s3771_s15 = smov [#allocation5]   ;;  %s3718_s19 = scalar_lea.hbm %s3996_s3, 8192 }
  0x14   :  { %s36_s16 = sshll.u32 %s3771_s15, 4  ;;  %p3719_p8 = scmp.ne.s32.totalorder %s3996_s3, %s3718_s19  ;;  %s37_s16 = int_to_ptr.vmem [resolvable:$true] %s36_s16 }
  0x15   :  { %p3722_p9 = scmp.lt.u32.totalorder %s3718_s19, %s3996_s3 }
  0x17   :  { %p3724_p10 = pnand %p3722_p9, %p3719_p8 }
  0x19   :  { %3727 = shalt.err (!%p3724_p10)
}
  0x1a   :  { %s3728_s24 = scalar_lea.vmem %s37_s16, 8192  ;;  %p3733_p12 = scmp.lt.s32.totalorder %s37_s16, %s37_s16 }
  0x1b   :  { %p3729_p11 = scmp.ne.s32.totalorder %s37_s16, %s3728_s24  ;;  %p3734_p13 = scmp.lt.s32.totalorder %s3728_s24, %s3728_s24 }
  0x1d   :  { %p3735_p0 = por %p3734_p13, %p3733_p12 }
  0x1f   :  { %p3736_p1 = pnand %p3735_p0, %p3729_p11 }
  0x21   :  { %3739 = shalt.err (!%p3736_p1)
}
  0x22   :  { %s3772_s1 = smov 128   ;;  %s3773_s25 = smov 8  }
  0x23   :  { %42 = dma.hbm_to_vmem [thread:$0]  %s3996_s3, 8192, %s37_s16, [#allocation6], %s3772_s1, %s3772_s1, %s3773_s25  }
  0x24   :  { %3762 = dma.done.wait [#allocation3], 32768  }
  0x25   :  { %3763 = vsyncadd [#allocation3], 4294934528 }
  0x26   :  { %3764 = dma.done.wait [#allocation6], 8192  }
  0x27   :  { %3765 = vsyncadd [#allocation6], 4294959104  ;;  %v3174_v0 = vld [vmem:[#allocation2 + $0x4] ss:$16 sps:$4 sm:$0xff]   ;;  %v3178_v2 = vld [vmem:[#allocation2] ss:$16 sps:$4 sm:$0xff]   ;;  %v64_v38 = vlaneseq }
  0x28   :  { %v3176_v1 = vld [vmem:[#allocation2 + $0x204] ss:$16 sps:$4 sm:$0xff]   ;;  %1668 = vmatprep.subr.bf16.mxu1 %v3174_v0  ;;  %v3179_v3 = vld [vmem:[#allocation2 + $0x200] ss:$16 sps:$4 sm:$0xff]   ;;  %v3774_v36 = vmov 1983009808  }
  0x29   :  { %1709 = vmatprep.subr.bf16.mxu0 %v3176_v1  ;;  %v3180_v4 = vld [vmem:[#allocation2 + $0x24] ss:$16 sps:$4 sm:$0xff]   ;;  %1669 = vmatpush1.bf16.msra.mxu1 %v3178_v2  ;;  %v3184_v6 = vld [vmem:[#allocation2 + $0x20] ss:$16 sps:$4 sm:$0xff]   ;;  %v62_v37 = vunpack.c.l.s4 %v3774_v36  ;;  %v3840_v43 = vshrl.u32 %v64_v38, 7  ;;  %s3775_s15 = smov [#allocation7]  }
  0x2a   :  { %1710 = vmatpush1.bf16.msra.mxu0 %v3179_v3  ;;  %v3182_v5 = vld [vmem:[#allocation2 + $0x224] ss:$16 sps:$4 sm:$0xff]   ;;  %1670 = vmatprep.subr.bf16.mxu1 %v3180_v4  ;;  %v3185_v7 = vld [vmem:[#allocation2 + $0x220] ss:$16 sps:$4 sm:$0xff]   ;;  %s2765_s16 = sshll.u32 %s3775_s15, 4  ;;  %vm2757_vm6 = vcmask 254976   ;;  %s2766_s16 = int_to_ptr.vmem [resolvable:$true] %s2765_s16 }
  0x2b   :  { %1711 = vmatprep.subr.bf16.mxu0 %v3182_v5  ;;  %v3186_v8 = vld [vmem:[#allocation2 + $0x44] ss:$16 sps:$4 sm:$0xff]   ;;  %v3190_v10 = vld [vmem:[#allocation2 + $0x40] ss:$16 sps:$4 sm:$0xff]   ;;  %v63_v42 = vunpack.c.0.s8 %v62_v37  ;;  %v3306_v37 = vld [vmem:[#allocation2 + $0xac] ss:$16 sps:$4 sm:$0xff]   ;;  %p3745_p3 = scmp.lt.s32.totalorder %s2766_s16, %s2766_s16 }
  0x2c   :  { %v3188_v9 = vld [vmem:[#allocation2 + $0x244] ss:$16 sps:$4 sm:$0xff]   ;;  %v3191_v11 = vld [vmem:[#allocation2 + $0x240] ss:$16 sps:$4 sm:$0xff]   ;;  %s3740_s17 = scalar_lea.vmem %s2766_s16, 32 }
  0x2d   :  { %1671 = vmatpush1.bf16.msra.mxu1 %v3184_v6  ;;  %v3192_v12 = vld [vmem:[#allocation2 + $0x64] ss:$16 sps:$4 sm:$0xff]   ;;  %v3196_v14 = vld [vmem:[#allocation2 + $0x60] ss:$16 sps:$4 sm:$0xff]   ;;  %v3843_v49 = vsub.s32 %v63_v42, %v3840_v43  ;;  %v3862_v42 = vld [vmem:[%s3993_s0 + $0x8] sm:$0xff]  ;;  %p3741_p2 = scmp.ne.s32.totalorder %s2766_s16, %s3740_s17  ;;  %p3746_p4 = scmp.lt.s32.totalorder %s3740_s17, %s3740_s17 }
  0x2e   :  { %1712 = vmatpush1.bf16.msra.mxu0 %v3185_v7  ;;  %1672 = vmatprep.subr.bf16.mxu1 %v3186_v8  ;;  %v3194_v13 = vld [vmem:[#allocation2 + $0x264] ss:$16 sps:$4 sm:$0xff]   ;;  %v3197_v15 = vld [vmem:[#allocation2 + $0x260] ss:$16 sps:$4 sm:$0xff]  }
  0x2f   :  { %1713 = vmatprep.subr.bf16.mxu0 %v3188_v9  ;;  %v3198_v16 = vld [vmem:[#allocation2 + $0x84] ss:$16 sps:$4 sm:$0xff]   ;;  %v3202_v18 = vld [vmem:[#allocation2 + $0x80] ss:$16 sps:$4 sm:$0xff]   ;;  %p3747_p5 = por %p3746_p4, %p3745_p3 }
  0x30   :  { %v3200_v17 = vld [vmem:[#allocation2 + $0x284] ss:$16 sps:$4 sm:$0xff]   ;;  %v3203_v19 = vld [vmem:[#allocation2 + $0x280] ss:$16 sps:$4 sm:$0xff]  }
  0x31   :  { %1673 = vmatpush1.bf16.msra.mxu1 %v3190_v10  ;;  %v3204_v20 = vld [vmem:[#allocation2 + $0xa4] ss:$16 sps:$4 sm:$0xff]   ;;  %v3208_v22 = vld [vmem:[#allocation2 + $0xa0] ss:$16 sps:$4 sm:$0xff]   ;;  %p3748_p6 = pnand %p3747_p5, %p3741_p2 }
  0x32   :  { %1714 = vmatpush1.bf16.msra.mxu0 %v3191_v11  ;;  %1674 = vmatprep.subr.bf16.mxu1 %v3192_v12  ;;  %v3206_v21 = vld [vmem:[#allocation2 + $0x2a4] ss:$16 sps:$4 sm:$0xff]   ;;  %v3209_v23 = vld [vmem:[#allocation2 + $0x2a0] ss:$16 sps:$4 sm:$0xff]  }
  0x33   :  { %1715 = vmatprep.subr.bf16.mxu0 %v3194_v13  ;;  %v3210_v24 = vld [vmem:[#allocation2 + $0xc4] ss:$16 sps:$4 sm:$0xff]   ;;  %v3214_v26 = vld [vmem:[#allocation2 + $0xc0] ss:$16 sps:$4 sm:$0xff]  }
  0x34   :  { %v3212_v25 = vld [vmem:[#allocation2 + $0x2c4] ss:$16 sps:$4 sm:$0xff]   ;;  %v3215_v27 = vld [vmem:[#allocation2 + $0x2c0] ss:$16 sps:$4 sm:$0xff]  }
  0x35   :  { %1675 = vmatpush1.bf16.msra.mxu1 %v3196_v14  ;;  %v3216_v28 = vld [vmem:[#allocation2 + $0xe4] ss:$16 sps:$4 sm:$0xff]   ;;  %v3220_v30 = vld [vmem:[#allocation2 + $0xe0] ss:$16 sps:$4 sm:$0xff]  }
  0x36   :  { %1716 = vmatpush1.bf16.msra.mxu0 %v3197_v15  ;;  %1676 = vmatprep.subr.bf16.mxu1 %v3198_v16  ;;  %v3218_v29 = vld [vmem:[#allocation2 + $0x2e4] ss:$16 sps:$4 sm:$0xff]   ;;  %v3221_v31 = vld [vmem:[#allocation2 + $0x2e0] ss:$16 sps:$4 sm:$0xff]   ;;  %v3276_v15 = vld [vmem:[#allocation2 + $0xc] ss:$16 sps:$4 sm:$0xff]  }
  0x37   :  { %1717 = vmatprep.subr.bf16.mxu0 %v3200_v17  ;;  %v3222_v32 = vld [vmem:[#allocation2 + $0x104] ss:$16 sps:$4 sm:$0xff]   ;;  %v3226_v34 = vld [vmem:[#allocation2 + $0x100] ss:$16 sps:$4 sm:$0xff]  }
  0x38   :  { %v3224_v33 = vld [vmem:[#allocation2 + $0x304] ss:$16 sps:$4 sm:$0xff]   ;;  %v3227_v35 = vld [vmem:[#allocation2 + $0x300] ss:$16 sps:$4 sm:$0xff]  }
  0x39   :  { %1677 = vmatpush1.bf16.msra.mxu1 %v3202_v18  ;;  %v3228_v39 = vld [vmem:[#allocation2 + $0x124] ss:$16 sps:$4 sm:$0xff]   ;;  %v3232_v41 = vld [vmem:[#allocation2 + $0x120] ss:$16 sps:$4 sm:$0xff]  }
  0x3a   :  { %1718 = vmatpush1.bf16.msra.mxu0 %v3203_v19  ;;  %1678 = vmatprep.subr.bf16.mxu1 %v3204_v20  ;;  %v3230_v40 = vld [vmem:[#allocation2 + $0x324] ss:$16 sps:$4 sm:$0xff]   ;;  %v3233_v44 = vld [vmem:[#allocation2 + $0x320] ss:$16 sps:$4 sm:$0xff]   ;;  %v3274_v19 = vld [vmem:[#allocation2 + $0x8] ss:$16 sps:$4 sm:$0xff]  }
  0x3b   :  { %1719 = vmatprep.subr.bf16.mxu0 %v3206_v21  ;;  %v3234_v45 = vld [vmem:[#allocation2 + $0x144] ss:$16 sps:$4 sm:$0xff]   ;;  %v3238_v47 = vld [vmem:[#allocation2 + $0x140] ss:$16 sps:$4 sm:$0xff]   ;;  %v3282_v21 = vld [vmem:[#allocation2 + $0x2c] ss:$16 sps:$4 sm:$0xff]  }
  0x3c   :  { %v3236_v46 = vld [vmem:[#allocation2 + $0x344] ss:$16 sps:$4 sm:$0xff]   ;;  %v3239_v48 = vld [vmem:[#allocation2 + $0x340] ss:$16 sps:$4 sm:$0xff]  }
  0x3d   :  { %1679 = vmatpush1.bf16.msra.mxu1 %v3208_v22  ;;  %v3240_v50 = vld [vmem:[#allocation2 + $0x164] ss:$16 sps:$4 sm:$0xff]   ;;  %v3244_v53 = vld [vmem:[#allocation2 + $0x160] ss:$16 sps:$4 sm:$0xff]  }
  0x3e   :  { %1720 = vmatpush1.bf16.msra.mxu0 %v3209_v23  ;;  %1680 = vmatprep.subr.bf16.mxu1 %v3210_v24  ;;  %v3242_v51 = vld [vmem:[#allocation2 + $0x364] ss:$16 sps:$4 sm:$0xff]   ;;  %v3245_v56 = vld [vmem:[#allocation2 + $0x360] ss:$16 sps:$4 sm:$0xff]   ;;  %v3280_v23 = vld [vmem:[#allocation2 + $0x28] ss:$16 sps:$4 sm:$0xff]  }
  0x3f   :  { %1721 = vmatprep.subr.bf16.mxu0 %v3212_v25  ;;  %v56_v52 = vld [vmem:[%s3993_s0] sm:$0xff]  ;;  %v3288_v25 = vld [vmem:[#allocation2 + $0x4c] ss:$16 sps:$4 sm:$0xff]  }
  0x40   :  { %v67_v54 = vrot.slane %v56_v52, %v3843_v49  ;;  %v60_v55 = vcombine.high %v56_v52, %v56_v52  ;;  %v3246_v57 = vld [vmem:[#allocation2 + $0x184] ss:$16 sps:$4 sm:$0xff]   ;;  %v3250_v61 = vld [vmem:[#allocation2 + $0x180] ss:$16 sps:$4 sm:$0xff]  }
  0x41   :  { %1681 = vmatpush1.bf16.msra.mxu1 %v3214_v26  ;;  %v3248_v58 = vld [vmem:[#allocation2 + $0x384] ss:$16 sps:$4 sm:$0xff]   ;;  %v3251_v0 = vld [vmem:[#allocation2 + $0x380] ss:$16 sps:$4 sm:$0xff]  }
  0x42   :  { %1722 = vmatpush1.bf16.msra.mxu0 %v3215_v27  ;;  %1682 = vmatprep.subr.bf16.mxu1 %v3216_v28  ;;  %v75_v59 = vcombine.high %v67_v54, %v67_v54  ;;  %v74_v60 = vrot.slane %v60_v55, %v3843_v49  ;;  %v3252_v1 = vld [vmem:[#allocation2 + $0x1a4] ss:$16 sps:$4 sm:$0xff]   ;;  %v3256_v4 = vld [vmem:[#allocation2 + $0x1a0] ss:$16 sps:$4 sm:$0xff]   ;;  %v3853_v16 = vpack.c.bf16 %v67_v54, %v67_v54  ;;  %v3286_v27 = vld [vmem:[#allocation2 + $0x48] ss:$16 sps:$4 sm:$0xff]  }
  0x43   :  { %1723 = vmatprep.subr.bf16.mxu0 %v3218_v29  ;;  %v3254_v2 = vld [vmem:[#allocation2 + $0x3a4] ss:$16 sps:$4 sm:$0xff]   ;;  %v3257_v5 = vld [vmem:[#allocation2 + $0x3a0] ss:$16 sps:$4 sm:$0xff]   ;;  %v3294_v29 = vld [vmem:[#allocation2 + $0x6c] ss:$16 sps:$4 sm:$0xff]  }
  0x44   :  { %v103_v62 = vpack.c.bf16 %v75_v59, %v75_v59  ;;  %v76_v63 = vcombine.high %v74_v60, %v74_v60  ;;  %v3258_v6 = vld [vmem:[#allocation2 + $0x1c4] ss:$16 sps:$4 sm:$0xff]   ;;  %v3262_v8 = vld [vmem:[#allocation2 + $0x1c0] ss:$16 sps:$4 sm:$0xff]   ;;  %v3855_v18 = vpack.c.bf16 %v74_v60, %v74_v60  ;;  %v3324_v55 = vld [vmem:[#allocation2 + $0x10c] ss:$16 sps:$4 sm:$0xff]  }
  0x45   :  { %1683 = vmatpush1.bf16.msra.mxu1 %v3220_v30  ;;  %v3260_v7 = vld [vmem:[#allocation2 + $0x3c4] ss:$16 sps:$4 sm:$0xff]   ;;  %v3263_v9 = vld [vmem:[#allocation2 + $0x3c0] ss:$16 sps:$4 sm:$0xff]   ;;  %v3330_v59 = vld [vmem:[#allocation2 + $0x12c] ss:$16 sps:$4 sm:$0xff]  }
  0x46   :  { %1724 = vmatpush1.bf16.msra.mxu0 %v3221_v31  ;;  %1684 = vmatprep.subr.bf16.mxu1 %v3222_v32  ;;  %v3850_v3 = vpack.c.bf16 %v76_v63, %v76_v63  ;;  %v3264_v10 = vld [vmem:[#allocation2 + $0x1e4] ss:$16 sps:$4 sm:$0xff]   ;;  %v3268_v12 = vld [vmem:[#allocation2 + $0x1e0] ss:$16 sps:$4 sm:$0xff]   ;;  %v3292_v31 = vld [vmem:[#allocation2 + $0x68] ss:$16 sps:$4 sm:$0xff]  }
  0x47   :  { %1725 = vmatprep.subr.bf16.mxu0 %v3224_v33  ;;  %1700 = vmatprep.mubr.bf16.mxu1 %v103_v62  ;;  %v3266_v11 = vld [vmem:[#allocation2 + $0x3e4] ss:$16 sps:$4 sm:$0xff]   ;;  %v3269_v13 = vld [vmem:[#allocation2 + $0x3e0] ss:$16 sps:$4 sm:$0xff]   ;;  %v3300_v33 = vld [vmem:[#allocation2 + $0x8c] ss:$16 sps:$4 sm:$0xff]  }
  0x48   :  { %1741 = vmatprep.mubr.bf16.mxu0 %v3850_v3  ;;  %v3273_v14 = vld [vmem:[#allocation2 + $0x404] ss:$16 sps:$4 sm:$0xff]   ;;  %v3271_v17 = vld [vmem:[#allocation2 + $0x400] ss:$16 sps:$4 sm:$0xff]   ;;  %v3336_v63 = vld [vmem:[#allocation2 + $0x14c] ss:$16 sps:$4 sm:$0xff]  }
  0x49   :  { %1685 = vmatpush1.bf16.msra.mxu1 %v3226_v34  ;;  %v3279_v20 = vld [vmem:[#allocation2 + $0x424] ss:$16 sps:$4 sm:$0xff]   ;;  %v3277_v22 = vld [vmem:[#allocation2 + $0x420] ss:$16 sps:$4 sm:$0xff]  }
  0x4a   :  { %1726 = vmatpush1.bf16.msra.mxu0 %v3227_v35  ;;  %1686 = vmatprep.subr.bf16.mxu1 %v3228_v39  ;;  %v3285_v24 = vld [vmem:[#allocation2 + $0x444] ss:$16 sps:$4 sm:$0xff]   ;;  %v3283_v26 = vld [vmem:[#allocation2 + $0x440] ss:$16 sps:$4 sm:$0xff]   ;;  %v3298_v35 = vld [vmem:[#allocation2 + $0x88] ss:$16 sps:$4 sm:$0xff]  }
  0x4b   :  { %1727 = vmatprep.subr.bf16.mxu0 %v3230_v40  ;;  %v3291_v28 = vld [vmem:[#allocation2 + $0x464] ss:$16 sps:$4 sm:$0xff]   ;;  %v3289_v30 = vld [vmem:[#allocation2 + $0x460] ss:$16 sps:$4 sm:$0xff]   ;;  %v3304_v39 = vld [vmem:[#allocation2 + $0xa8] ss:$16 sps:$4 sm:$0xff]  }
  0x4c   :  { %v3297_v32 = vld [vmem:[#allocation2 + $0x484] ss:$16 sps:$4 sm:$0xff]   ;;  %v3295_v34 = vld [vmem:[#allocation2 + $0x480] ss:$16 sps:$4 sm:$0xff]  }
  0x4d   :  { %1687 = vmatpush1.bf16.msra.mxu1 %v3232_v41  ;;  %v3303_v36 = vld [vmem:[#allocation2 + $0x4a4] ss:$16 sps:$4 sm:$0xff]   ;;  %v3301_v38 = vld [vmem:[#allocation2 + $0x4a0] ss:$16 sps:$4 sm:$0xff]   ;;  %v3312_v41 = vld [vmem:[#allocation2 + $0xcc] ss:$16 sps:$4 sm:$0xff]  }
  0x4e   :  { %1728 = vmatpush1.bf16.msra.mxu0 %v3233_v44  ;;  %1688 = vmatprep.subr.bf16.mxu1 %v3234_v45  ;;  %v3309_v40 = vld [vmem:[#allocation2 + $0x4c4] ss:$16 sps:$4 sm:$0xff]   ;;  %v3866_v44 = vrot.slane %v3862_v42, %v3843_v49  ;;  %v3307_v45 = vld [vmem:[#allocation2 + $0x4c0] ss:$16 sps:$4 sm:$0xff]  }
  0x4f   :  { %1729 = vmatprep.subr.bf16.mxu0 %v3236_v46  ;;  %v3310_v46 = vld [vmem:[#allocation2 + $0xc8] ss:$16 sps:$4 sm:$0xff]   ;;  %v3313_v52 = vld [vmem:[#allocation2 + $0x4e0] ss:$16 sps:$4 sm:$0xff]   ;;  %v3321_v54 = vld [vmem:[#allocation2 + $0x504] ss:$16 sps:$4 sm:$0xff]  }
  0x50   :  { %v3325_v60 = vld [vmem:[#allocation2 + $0x520] ss:$16 sps:$4 sm:$0xff]  }
  0x51   :  { %1689 = vmatpush1.bf16.msra.mxu1 %v3238_v47  ;;  %v92_v47 = vcombine.high %v3866_v44, %v3866_v44 }
  0x52   :  { %1730 = vmatpush1.bf16.msra.mxu0 %v3239_v48  ;;  %1690 = vmatprep.subr.bf16.mxu1 %v3240_v50  ;;  %v3315_v48 = vld [vmem:[#allocation2 + $0x4e4] ss:$16 sps:$4 sm:$0xff]   ;;  %v3318_v50 = vld [vmem:[#allocation2 + $0xec] ss:$16 sps:$4 sm:$0xff]  }
  0x53   :  { %1731 = vmatprep.subr.bf16.mxu0 %v3242_v51  ;;  %v3870_v51 = vpack.c.bf16 %v92_v47, %v92_v47  ;;  %v3391_v47 = vld [vmem:[#allocation2 + $0x680] ss:$16 sps:$4 sm:$0xff]  }
  0x55   :  { %1691 = vmatpush1.bf16.msra.mxu1 %v3244_v53  ;;  %v3316_v53 = vld [vmem:[#allocation2 + $0xe8] ss:$16 sps:$4 sm:$0xff]  }
  0x56   :  { %1732 = vmatpush1.bf16.msra.mxu0 %v3245_v56  ;;  %1692 = vmatprep.subr.bf16.mxu1 %v3246_v57  ;;  %v3319_v56 = vld [vmem:[#allocation2 + $0x500] ss:$16 sps:$4 sm:$0xff]   ;;  %v3322_v57 = vld [vmem:[#allocation2 + $0x108] ss:$16 sps:$4 sm:$0xff]  }
  0x57   :  { %1733 = vmatprep.subr.bf16.mxu0 %v3248_v58  ;;  %v3327_v58 = vld [vmem:[#allocation2 + $0x524] ss:$16 sps:$4 sm:$0xff]  }
  0x59   :  { %1693 = vmatpush1.bf16.msra.mxu1 %v3250_v61  ;;  %v3328_v61 = vld [vmem:[#allocation2 + $0x128] ss:$16 sps:$4 sm:$0xff]  }
  0x5a   :  { %1734 = vmatpush1.bf16.msra.mxu0 %v3251_v0  ;;  %1694 = vmatprep.subr.bf16.mxu1 %v3252_v1  ;;  %v3331_v0 = vld [vmem:[#allocation2 + $0x540] ss:$16 sps:$4 sm:$0xff]   ;;  %v3334_v1 = vld [vmem:[#allocation2 + $0x148] ss:$16 sps:$4 sm:$0xff]  }
  0x5b   :  { %1735 = vmatprep.subr.bf16.mxu0 %v3254_v2  ;;  %v3339_v2 = vld [vmem:[#allocation2 + $0x564] ss:$16 sps:$4 sm:$0xff]  }
  0x5d   :  { %1695 = vmatpush1.bf16.msra.mxu1 %v3256_v4  ;;  %v3342_v4 = vld [vmem:[#allocation2 + $0x16c] ss:$16 sps:$4 sm:$0xff]  }
  0x5e   :  { %1736 = vmatpush1.bf16.msra.mxu0 %v3257_v5  ;;  %1696 = vmatprep.subr.bf16.mxu1 %v3258_v6  ;;  %v3337_v5 = vld [vmem:[#allocation2 + $0x560] ss:$16 sps:$4 sm:$0xff]   ;;  %v3340_v6 = vld [vmem:[#allocation2 + $0x168] ss:$16 sps:$4 sm:$0xff]  }
  0x5f   :  { %1737 = vmatprep.subr.bf16.mxu0 %v3260_v7  ;;  %v3345_v7 = vld [vmem:[#allocation2 + $0x584] ss:$16 sps:$4 sm:$0xff]  }
  0x61   :  { %1697 = vmatpush1.bf16.msra.mxu1 %v3262_v8  ;;  %v3348_v8 = vld [vmem:[#allocation2 + $0x18c] ss:$16 sps:$4 sm:$0xff]  }
  0x62   :  { %1738 = vmatpush1.bf16.msra.mxu0 %v3263_v9  ;;  %1698 = vmatprep.subr.bf16.mxu1 %v3264_v10  ;;  %v3343_v9 = vld [vmem:[#allocation2 + $0x580] ss:$16 sps:$4 sm:$0xff]   ;;  %v3346_v10 = vld [vmem:[#allocation2 + $0x188] ss:$16 sps:$4 sm:$0xff]  }
  0x63   :  { %1739 = vmatprep.subr.bf16.mxu0 %v3266_v11  ;;  %v3351_v11 = vld [vmem:[#allocation2 + $0x5a4] ss:$16 sps:$4 sm:$0xff]  }
  0x65   :  { %1699 = vmatpush1.bf16.msra.mxu1 %v3268_v12  ;;  %v3354_v12 = vld [vmem:[#allocation2 + $0x1ac] ss:$16 sps:$4 sm:$0xff]  }
  0x66   :  { %1740 = vmatpush1.bf16.msra.mxu0 %v3269_v13  ;;  %1832 = vmatprep.subr.bf16.mxu1 %v3276_v15  ;;  %v3349_v13 = vld [vmem:[#allocation2 + $0x5a0] ss:$16 sps:$4 sm:$0xff]   ;;  %v3357_v15 = vld [vmem:[#allocation2 + $0x5c4] ss:$16 sps:$4 sm:$0xff]  }
  0x67   :  { %1750 = vmatprep.subr.bf16.mxu0 %v3273_v14  ;;  %v3352_v14 = vld [vmem:[#allocation2 + $0x1a8] ss:$16 sps:$4 sm:$0xff]  }
  0x68   :  { %1701 = vmatmul.mubr.bf16.vlgmr.msra.gmra.mrb[0].mxu1 %v3853_v16 }
  0x69   :  { %1742 = vmatmul.mubr.bf16.vlgmr.msra.gmra.mrb[0].mxu0 %v3855_v18  ;;  %1833 = vmatpush1.bf16.msra.mxu1 %v3274_v19  ;;  %v77_v19 = vcombine.high %v3862_v42, %v3862_v42  ;;  %v3385_v42 = vld [vmem:[#allocation2 + $0x660] ss:$16 sps:$4 sm:$0xff]  }
  0x6a   :  { %1751 = vmatpush1.bf16.msra.mxu0 %v3271_v17  ;;  %1834 = vmatprep.subr.bf16.mxu1 %v3282_v21  ;;  %v3360_v17 = vld [vmem:[#allocation2 + $0x1cc] ss:$16 sps:$4 sm:$0xff]   ;;  %v3358_v21 = vld [vmem:[#allocation2 + $0x1c8] ss:$16 sps:$4 sm:$0xff]  }
  0x6b   :  { %1752 = vmatprep.subr.bf16.mxu0 %v3279_v20  ;;  %1864 = vmatprep.mubr.bf16.mxu1 %v103_v62  ;;  %v3333_v62 = vld [vmem:[#allocation2 + $0x544] ss:$16 sps:$4 sm:$0xff]   ;;  %v3355_v20 = vld [vmem:[#allocation2 + $0x5c0] ss:$16 sps:$4 sm:$0xff]  }
  0x6c   :  { %1782 = vmatprep.mubr.bf16.mxu0 %v3870_v51 }
  0x6d   :  { %1835 = vmatpush1.bf16.msra.mxu1 %v3280_v23  ;;  %v3366_v23 = vld [vmem:[#allocation2 + $0x1ec] ss:$16 sps:$4 sm:$0xff]  }
  0x6e   :  { %1753 = vmatpush1.bf16.msra.mxu0 %v3277_v22  ;;  %1836 = vmatprep.subr.bf16.mxu1 %v3288_v25  ;;  %v3363_v22 = vld [vmem:[#allocation2 + $0x5e4] ss:$16 sps:$4 sm:$0xff]   ;;  %v3361_v25 = vld [vmem:[#allocation2 + $0x5e0] ss:$16 sps:$4 sm:$0xff]  }
  0x6f   :  { %1754 = vmatprep.subr.bf16.mxu0 %v3285_v24  ;;  %v3876_v24 = vrot.slane %v77_v19, %v3843_v49  ;;  %v3370_v49 = vld [vmem:[#allocation2 + $0x208] ss:$16 sps:$4 sm:$0xff]   ;;  %v3439_v19 = vld [vmem:[#allocation2 + $0x780] ss:$16 sps:$4 sm:$0xff]  }
  0x71   :  { %1837 = vmatpush1.bf16.msra.mxu1 %v3286_v27  ;;  %v3369_v27 = vld [vmem:[#allocation2 + $0x604] ss:$16 sps:$4 sm:$0xff]  }
  0x72   :  { %1755 = vmatpush1.bf16.msra.mxu0 %v3283_v26  ;;  %1838 = vmatprep.subr.bf16.mxu1 %v3294_v29  ;;  %v3364_v26 = vld [vmem:[#allocation2 + $0x1e8] ss:$16 sps:$4 sm:$0xff]   ;;  %v93_v29 = vcombine.high %v3876_v24, %v3876_v24 }
  0x73   :  { %1756 = vmatprep.subr.bf16.mxu0 %v3291_v28  ;;  %v3372_v28 = vld [vmem:[#allocation2 + $0x20c] ss:$16 sps:$4 sm:$0xff]  }
  0x75   :  { %1839 = vmatpush1.bf16.msra.mxu1 %v3292_v31  ;;  %v3367_v31 = vld [vmem:[#allocation2 + $0x600] ss:$16 sps:$4 sm:$0xff]  }
  0x76   :  { %1757 = vmatpush1.bf16.msra.mxu0 %v3289_v30  ;;  %1840 = vmatprep.subr.bf16.mxu1 %v3300_v33  ;;  %v3882_v30 = vpack.c.bf16 %v3866_v44, %v3866_v44  ;;  %v3378_v33 = vld [vmem:[#allocation2 + $0x22c] ss:$16 sps:$4 sm:$0xff]   ;;  %v3388_v44 = vld [vmem:[#allocation2 + $0x268] ss:$16 sps:$4 sm:$0xff]  }
  0x77   :  { %1758 = vmatprep.subr.bf16.mxu0 %v3297_v32  ;;  %v3375_v32 = vld [vmem:[#allocation2 + $0x624] ss:$16 sps:$4 sm:$0xff]  }
  0x79   :  { %1841 = vmatpush1.bf16.msra.mxu1 %v3298_v35  ;;  %v3373_v35 = vld [vmem:[#allocation2 + $0x620] ss:$16 sps:$4 sm:$0xff]  }
  0x7a   :  { %1759 = vmatpush1.bf16.msra.mxu0 %v3295_v34  ;;  %1842 = vmatprep.subr.bf16.mxu1 %v3306_v37  ;;  %v3884_v34 = vpack.c.bf16 %v93_v29, %v93_v29  ;;  %v3381_v37 = vld [vmem:[#allocation2 + $0x644] ss:$16 sps:$4 sm:$0xff]   ;;  %v3454_v29 = vld [vmem:[#allocation2 + $0x3c8] ss:$16 sps:$4 sm:$0xff]  }
  0x7b   :  { %1760 = vmatprep.subr.bf16.mxu0 %v3303_v36  ;;  %v3376_v36 = vld [vmem:[#allocation2 + $0x228] ss:$16 sps:$4 sm:$0xff]  }
  0x7d   :  { %1843 = vmatpush1.bf16.msra.mxu1 %v3304_v39  ;;  %v3379_v39 = vld [vmem:[#allocation2 + $0x640] ss:$16 sps:$4 sm:$0xff]  }
  0x7e   :  { %1761 = vmatpush1.bf16.msra.mxu0 %v3301_v38  ;;  %1844 = vmatprep.subr.bf16.mxu1 %v3312_v41  ;;  %v3384_v38 = vld [vmem:[#allocation2 + $0x24c] ss:$16 sps:$4 sm:$0xff]   ;;  %v3387_v41 = vld [vmem:[#allocation2 + $0x664] ss:$16 sps:$4 sm:$0xff]  }
  0x7f   :  { %1762 = vmatprep.subr.bf16.mxu0 %v3309_v40  ;;  %v3382_v40 = vld [vmem:[#allocation2 + $0x248] ss:$16 sps:$4 sm:$0xff]  }
  0x81   :  { %1845 = vmatpush1.bf16.msra.mxu1 %v3310_v46  ;;  %v3396_v46 = vld [vmem:[#allocation2 + $0x28c] ss:$16 sps:$4 sm:$0xff]  }
  0x82   :  { %1763 = vmatpush1.bf16.msra.mxu0 %v3307_v45  ;;  %1846 = vmatprep.subr.bf16.mxu1 %v3318_v50  ;;  %v3393_v45 = vld [vmem:[#allocation2 + $0x684] ss:$16 sps:$4 sm:$0xff]   ;;  %v3402_v50 = vld [vmem:[#allocation2 + $0x2ac] ss:$16 sps:$4 sm:$0xff]  }
  0x83   :  { %1764 = vmatprep.subr.bf16.mxu0 %v3315_v48  ;;  %v3399_v48 = vld [vmem:[#allocation2 + $0x6a4] ss:$16 sps:$4 sm:$0xff]  }
  0x85   :  { %1847 = vmatpush1.bf16.msra.mxu1 %v3316_v53  ;;  %v3400_v53 = vld [vmem:[#allocation2 + $0x2a8] ss:$16 sps:$4 sm:$0xff]  }
  0x86   :  { %1765 = vmatpush1.bf16.msra.mxu0 %v3313_v52  ;;  %1848 = vmatprep.subr.bf16.mxu1 %v3324_v55  ;;  %v3397_v52 = vld [vmem:[#allocation2 + $0x6a0] ss:$16 sps:$4 sm:$0xff]   ;;  %v3408_v55 = vld [vmem:[#allocation2 + $0x2cc] ss:$16 sps:$4 sm:$0xff]  }
  0x87   :  { %1766 = vmatprep.subr.bf16.mxu0 %v3321_v54  ;;  %v3405_v54 = vld [vmem:[#allocation2 + $0x6c4] ss:$16 sps:$4 sm:$0xff]  }
  0x89   :  { %1849 = vmatpush1.bf16.msra.mxu1 %v3322_v57  ;;  %v3406_v57 = vld [vmem:[#allocation2 + $0x2c8] ss:$16 sps:$4 sm:$0xff]  }
  0x8a   :  { %1767 = vmatpush1.bf16.msra.mxu0 %v3319_v56  ;;  %1850 = vmatprep.subr.bf16.mxu1 %v3330_v59  ;;  %v3403_v56 = vld [vmem:[#allocation2 + $0x6c0] ss:$16 sps:$4 sm:$0xff]   ;;  %v3414_v59 = vld [vmem:[#allocation2 + $0x2ec] ss:$16 sps:$4 sm:$0xff]  }
  0x8b   :  { %1768 = vmatprep.subr.bf16.mxu0 %v3327_v58  ;;  %v3411_v58 = vld [vmem:[#allocation2 + $0x6e4] ss:$16 sps:$4 sm:$0xff]  }
  0x8d   :  { %1851 = vmatpush1.bf16.msra.mxu1 %v3328_v61  ;;  %v3412_v61 = vld [vmem:[#allocation2 + $0x2e8] ss:$16 sps:$4 sm:$0xff]  }
  0x8e   :  { %1769 = vmatpush1.bf16.msra.mxu0 %v3325_v60  ;;  %1852 = vmatprep.subr.bf16.mxu1 %v3336_v63  ;;  %v3409_v60 = vld [vmem:[#allocation2 + $0x6e0] ss:$16 sps:$4 sm:$0xff]   ;;  %v3420_v63 = vld [vmem:[#allocation2 + $0x30c] ss:$16 sps:$4 sm:$0xff]  }
  0x8f   :  { %1770 = vmatprep.subr.bf16.mxu0 %v3333_v62  ;;  %v3417_v62 = vld [vmem:[#allocation2 + $0x704] ss:$16 sps:$4 sm:$0xff]  }
  0x91   :  { %1853 = vmatpush1.bf16.msra.mxu1 %v3334_v1  ;;  %v3418_v1 = vld [vmem:[#allocation2 + $0x308] ss:$16 sps:$4 sm:$0xff]  }
  0x92   :  { %1771 = vmatpush1.bf16.msra.mxu0 %v3331_v0  ;;  %1854 = vmatprep.subr.bf16.mxu1 %v3342_v4  ;;  %v3415_v0 = vld [vmem:[#allocation2 + $0x700] ss:$16 sps:$4 sm:$0xff]   ;;  %v3426_v4 = vld [vmem:[#allocation2 + $0x32c] ss:$16 sps:$4 sm:$0xff]  }
  0x93   :  { %1772 = vmatprep.subr.bf16.mxu0 %v3339_v2  ;;  %v3423_v2 = vld [vmem:[#allocation2 + $0x724] ss:$16 sps:$4 sm:$0xff]  }
  0x95   :  { %1855 = vmatpush1.bf16.msra.mxu1 %v3340_v6  ;;  %v3424_v6 = vld [vmem:[#allocation2 + $0x328] ss:$16 sps:$4 sm:$0xff]  }
  0x96   :  { %1773 = vmatpush1.bf16.msra.mxu0 %v3337_v5  ;;  %1856 = vmatprep.subr.bf16.mxu1 %v3348_v8  ;;  %v3421_v5 = vld [vmem:[#allocation2 + $0x720] ss:$16 sps:$4 sm:$0xff]   ;;  %v3432_v8 = vld [vmem:[#allocation2 + $0x34c] ss:$16 sps:$4 sm:$0xff]  }
  0x97   :  { %1774 = vmatprep.subr.bf16.mxu0 %v3345_v7  ;;  %v3429_v7 = vld [vmem:[#allocation2 + $0x744] ss:$16 sps:$4 sm:$0xff]  }
  0x99   :  { %1857 = vmatpush1.bf16.msra.mxu1 %v3346_v10  ;;  %v3430_v10 = vld [vmem:[#allocation2 + $0x348] ss:$16 sps:$4 sm:$0xff]  }
  0x9a   :  { %1775 = vmatpush1.bf16.msra.mxu0 %v3343_v9  ;;  %1858 = vmatprep.subr.bf16.mxu1 %v3354_v12  ;;  %v3427_v9 = vld [vmem:[#allocation2 + $0x740] ss:$16 sps:$4 sm:$0xff]   ;;  %v3438_v12 = vld [vmem:[#allocation2 + $0x36c] ss:$16 sps:$4 sm:$0xff]  }
  0x9b   :  { %1776 = vmatprep.subr.bf16.mxu0 %v3351_v11  ;;  %v3435_v11 = vld [vmem:[#allocation2 + $0x764] ss:$16 sps:$4 sm:$0xff]  }
  0x9d   :  { %1859 = vmatpush1.bf16.msra.mxu1 %v3352_v14  ;;  %v3436_v14 = vld [vmem:[#allocation2 + $0x368] ss:$16 sps:$4 sm:$0xff]  }
  0x9e   :  { %1777 = vmatpush1.bf16.msra.mxu0 %v3349_v13  ;;  %1860 = vmatprep.subr.bf16.mxu1 %v3360_v17  ;;  %v3433_v13 = vld [vmem:[#allocation2 + $0x760] ss:$16 sps:$4 sm:$0xff]   ;;  %v3444_v17 = vld [vmem:[#allocation2 + $0x38c] ss:$16 sps:$4 sm:$0xff]  }
  0x9f   :  { %1778 = vmatprep.subr.bf16.mxu0 %v3357_v15  ;;  %v3441_v15 = vld [vmem:[#allocation2 + $0x784] ss:$16 sps:$4 sm:$0xff]  }
  0xa1   :  { %1861 = vmatpush1.bf16.msra.mxu1 %v3358_v21  ;;  %v3447_v21 = vld [vmem:[#allocation2 + $0x7a4] ss:$16 sps:$4 sm:$0xff]  }
  0xa2   :  { %1779 = vmatpush1.bf16.msra.mxu0 %v3355_v20  ;;  %1862 = vmatprep.subr.bf16.mxu1 %v3366_v23  ;;  %v3442_v20 = vld [vmem:[#allocation2 + $0x388] ss:$16 sps:$4 sm:$0xff]   ;;  %v3445_v23 = vld [vmem:[#allocation2 + $0x7a0] ss:$16 sps:$4 sm:$0xff]  }
  0xa3   :  { %1780 = vmatprep.subr.bf16.mxu0 %v3363_v22  ;;  %v3450_v22 = vld [vmem:[#allocation2 + $0x3ac] ss:$16 sps:$4 sm:$0xff]  }
  0xa5   :  { %1863 = vmatpush1.bf16.msra.mxu1 %v3364_v26  ;;  %v3453_v26 = vld [vmem:[#allocation2 + $0x7c4] ss:$16 sps:$4 sm:$0xff]  }
  0xa6   :  { %1781 = vmatpush1.bf16.msra.mxu0 %v3361_v25  ;;  %1873 = vmatprep.subr.bf16.mxu1 %v3372_v28  ;;  %v3448_v25 = vld [vmem:[#allocation2 + $0x3a8] ss:$16 sps:$4 sm:$0xff]   ;;  %v3451_v28 = vld [vmem:[#allocation2 + $0x7c0] ss:$16 sps:$4 sm:$0xff]  }
  0xa7   :  { %1791 = vmatprep.subr.bf16.mxu0 %v3369_v27  ;;  %v3456_v27 = vld [vmem:[#allocation2 + $0x3cc] ss:$16 sps:$4 sm:$0xff]  }
  0xa8   :  { %1865 = vmatmul.mubr.bf16.vlgmr.msra.gmra.mrb[4].mxu1 %v3853_v16  ;;  %v3390_v16 = vld [vmem:[#allocation2 + $0x26c] ss:$16 sps:$4 sm:$0xff]  }
  0xa9   :  { %1783 = vmatmul.mubr.bf16.vlgmr.msra.gmra.mrb[0].mxu0 %v3882_v30  ;;  %1874 = vmatpush1.bf16.msra.mxu1 %v3370_v49  ;;  %v3462_v49 = vld [vmem:[#allocation2 + $0x3ec] ss:$16 sps:$4 sm:$0xff]  }
  0xaa   :  { %1792 = vmatpush1.bf16.msra.mxu0 %v3367_v31  ;;  %1875 = vmatprep.subr.bf16.mxu1 %v3378_v33  ;;  %v3459_v31 = vld [vmem:[#allocation2 + $0x7e4] ss:$16 sps:$4 sm:$0xff]   ;;  %v3460_v33 = vld [vmem:[#allocation2 + $0x3e8] ss:$16 sps:$4 sm:$0xff]  }
  0xab   :  { %1793 = vmatprep.subr.bf16.mxu0 %v3375_v32  ;;  %1823 = vmatprep.mubr.bf16.mxu0 %v3884_v34  ;;  %v3457_v32 = vld [vmem:[#allocation2 + $0x7e0] ss:$16 sps:$4 sm:$0xff]  }
  0xac   :  { %1905 = vmatprep.mubr.bf16.mxu1 %v3850_v3  ;;  %v3394_v3 = vld [vmem:[#allocation2 + $0x288] ss:$16 sps:$4 sm:$0xff]  }
  0xad   :  { %1876 = vmatpush1.bf16.msra.mxu1 %v3376_v36  ;;  %v3464_v36 = vld [vmem:[#allocation2 + $0x408] ss:$16 sps:$4 sm:$0xff]  }
  0xae   :  { %1794 = vmatpush1.bf16.msra.mxu0 %v3373_v35  ;;  %1877 = vmatprep.subr.bf16.mxu1 %v3384_v38  ;;  %v3466_v35 = vld [vmem:[#allocation2 + $0x40c] ss:$16 sps:$4 sm:$0xff]  }
  0xaf   :  { %1795 = vmatprep.subr.bf16.mxu0 %v3381_v37  ;;  %v3892_v37 = vpack.c.bf16 %v3876_v24, %v3876_v24  ;;  %v3469_v38 = vld [vmem:[#allocation2 + $0x42c] ss:$16 sps:$4 sm:$0xff]   ;;  %v3563_v24 = vld [vmem:[#allocation5 + $0x10] ss:$8 sps:$4 sm:$0xff]  }
  0xb1   :  { %1878 = vmatpush1.bf16.msra.mxu1 %v3382_v40  ;;  %v3562_v40 = vld [vmem:[#allocation5 + $0x4] ss:$8 sps:$4 sm:$0xff]  }
  0xb2   :  { %1796 = vmatpush1.bf16.msra.mxu0 %v3379_v39  ;;  %1879 = vmatprep.subr.bf16.mxu1 %v3390_v16  ;;  %v3560_v39 = vld [vmem:[#allocation5] ss:$8 sps:$4 sm:$0xff]   ;;  %v3565_v16 = vld [vmem:[#allocation5 + $0x14] ss:$8 sps:$4 sm:$0xff]  }
  0xb3   :  { %1797 = vmatprep.subr.bf16.mxu0 %v3387_v41  ;;  %v3467_v41 = vld [vmem:[#allocation2 + $0x428] ss:$16 sps:$4 sm:$0xff]  }
  0xb5   :  { %1880 = vmatpush1.bf16.msra.mxu1 %v3388_v44  ;;  %v3470_v44 = vld [vmem:[#allocation2 + $0x448] ss:$16 sps:$4 sm:$0xff]  }
  0xb6   :  { %1798 = vmatpush1.bf16.msra.mxu0 %v3385_v42  ;;  %1881 = vmatprep.subr.bf16.mxu1 %v3396_v46  ;;  %v3472_v42 = vld [vmem:[#allocation2 + $0x44c] ss:$16 sps:$4 sm:$0xff]  }
  0xb7   :  { %1799 = vmatprep.subr.bf16.mxu0 %v3393_v45  ;;  %v3568_v45 = vld [vmem:[#allocation5 + $0x24] ss:$8 sps:$4 sm:$0xff]  }
  0xb8   :  { %v3475_v46 = vld [vmem:[#allocation2 + $0x46c] ss:$16 sps:$4 sm:$0xff]  }
  0xb9   :  { %1882 = vmatpush1.bf16.msra.mxu1 %v3394_v3  ;;  %v3473_v3 = vld [vmem:[#allocation2 + $0x468] ss:$16 sps:$4 sm:$0xff]  }
  0xba   :  { %1800 = vmatpush1.bf16.msra.mxu0 %v3391_v47  ;;  %1883 = vmatprep.subr.bf16.mxu1 %v3402_v50  ;;  %v3566_v47 = vld [vmem:[#allocation5 + $0x20] ss:$8 sps:$4 sm:$0xff]   ;;  %v3574_v50 = vld [vmem:[#allocation5 + $0x44] ss:$8 sps:$4 sm:$0xff]  }
  0xbb   :  { %1801 = vmatprep.subr.bf16.mxu0 %v3399_v48  ;;  %v3478_v48 = vld [vmem:[#allocation2 + $0x48c] ss:$16 sps:$4 sm:$0xff]  }
  0xbd   :  { %1884 = vmatpush1.bf16.msra.mxu1 %v3400_v53  ;;  %v3481_v53 = vld [vmem:[#allocation2 + $0x4ac] ss:$16 sps:$4 sm:$0xff]  }
  0xbe   :  { %1802 = vmatpush1.bf16.msra.mxu0 %v3397_v52  ;;  %1885 = vmatprep.subr.bf16.mxu1 %v3408_v55  ;;  %v3476_v52 = vld [vmem:[#allocation2 + $0x488] ss:$16 sps:$4 sm:$0xff]  }
  0xbf   :  { %1803 = vmatprep.subr.bf16.mxu0 %v3405_v54  ;;  %v3572_v54 = vld [vmem:[#allocation5 + $0x40] ss:$8 sps:$4 sm:$0xff]  }
  0xc0   :  { %v3479_v55 = vld [vmem:[#allocation2 + $0x4a8] ss:$16 sps:$4 sm:$0xff]  }
  0xc1   :  { %1886 = vmatpush1.bf16.msra.mxu1 %v3406_v57  ;;  %v3482_v57 = vld [vmem:[#allocation2 + $0x4c8] ss:$16 sps:$4 sm:$0xff]  }
  0xc2   :  { %1804 = vmatpush1.bf16.msra.mxu0 %v3403_v56  ;;  %1887 = vmatprep.subr.bf16.mxu1 %v3414_v59  ;;  %v3484_v56 = vld [vmem:[#allocation2 + $0x4cc] ss:$16 sps:$4 sm:$0xff]   ;;  %v3485_v59 = vld [vmem:[#allocation2 + $0x4e8] ss:$16 sps:$4 sm:$0xff]  }
  0xc3   :  { %1805 = vmatprep.subr.bf16.mxu0 %v3411_v58  ;;  %v3487_v58 = vld [vmem:[#allocation2 + $0x4ec] ss:$16 sps:$4 sm:$0xff]  }
  0xc5   :  { %1888 = vmatpush1.bf16.msra.mxu1 %v3412_v61  ;;  %v3488_v61 = vld [vmem:[#allocation2 + $0x508] ss:$16 sps:$4 sm:$0xff]  }
  0xc6   :  { %1806 = vmatpush1.bf16.msra.mxu0 %v3409_v60  ;;  %1889 = vmatprep.subr.bf16.mxu1 %v3420_v63  ;;  %v3490_v60 = vld [vmem:[#allocation2 + $0x50c] ss:$16 sps:$4 sm:$0xff]   ;;  %v3491_v63 = vld [vmem:[#allocation2 + $0x528] ss:$16 sps:$4 sm:$0xff]  }
  0xc7   :  { %1807 = vmatprep.subr.bf16.mxu0 %v3417_v62  ;;  %v3493_v62 = vld [vmem:[#allocation2 + $0x52c] ss:$16 sps:$4 sm:$0xff]  }
  0xc9   :  { %1890 = vmatpush1.bf16.msra.mxu1 %v3418_v1  ;;  %v3494_v1 = vld [vmem:[#allocation2 + $0x548] ss:$16 sps:$4 sm:$0xff]  }
  0xca   :  { %1808 = vmatpush1.bf16.msra.mxu0 %v3415_v0  ;;  %1891 = vmatprep.subr.bf16.mxu1 %v3426_v4  ;;  %v3496_v0 = vld [vmem:[#allocation2 + $0x54c] ss:$16 sps:$4 sm:$0xff]   ;;  %v3497_v4 = vld [vmem:[#allocation2 + $0x568] ss:$16 sps:$4 sm:$0xff]  }
  0xcb   :  { %1809 = vmatprep.subr.bf16.mxu0 %v3423_v2  ;;  %v3499_v2 = vld [vmem:[#allocation2 + $0x56c] ss:$16 sps:$4 sm:$0xff]  }
  0xcd   :  { %1892 = vmatpush1.bf16.msra.mxu1 %v3424_v6  ;;  %v3500_v6 = vld [vmem:[#allocation2 + $0x588] ss:$16 sps:$4 sm:$0xff]  }
  0xce   :  { %1810 = vmatpush1.bf16.msra.mxu0 %v3421_v5  ;;  %1893 = vmatprep.subr.bf16.mxu1 %v3432_v8  ;;  %v3502_v5 = vld [vmem:[#allocation2 + $0x58c] ss:$16 sps:$4 sm:$0xff]   ;;  %v3503_v8 = vld [vmem:[#allocation2 + $0x5a8] ss:$16 sps:$4 sm:$0xff]  }
  0xcf   :  { %1811 = vmatprep.subr.bf16.mxu0 %v3429_v7  ;;  %v3505_v7 = vld [vmem:[#allocation2 + $0x5ac] ss:$16 sps:$4 sm:$0xff]  }
  0xd1   :  { %1894 = vmatpush1.bf16.msra.mxu1 %v3430_v10  ;;  %v3506_v10 = vld [vmem:[#allocation2 + $0x5c8] ss:$16 sps:$4 sm:$0xff]  }
  0xd2   :  { %1812 = vmatpush1.bf16.msra.mxu0 %v3427_v9  ;;  %1895 = vmatprep.subr.bf16.mxu1 %v3438_v12  ;;  %v3508_v9 = vld [vmem:[#allocation2 + $0x5cc] ss:$16 sps:$4 sm:$0xff]   ;;  %v3509_v12 = vld [vmem:[#allocation2 + $0x5e8] ss:$16 sps:$4 sm:$0xff]  }
  0xd3   :  { %1813 = vmatprep.subr.bf16.mxu0 %v3435_v11  ;;  %v3511_v11 = vld [vmem:[#allocation2 + $0x5ec] ss:$16 sps:$4 sm:$0xff]  }
  0xd5   :  { %1896 = vmatpush1.bf16.msra.mxu1 %v3436_v14  ;;  %v3512_v14 = vld [vmem:[#allocation2 + $0x608] ss:$16 sps:$4 sm:$0xff]  }
  0xd6   :  { %1814 = vmatpush1.bf16.msra.mxu0 %v3433_v13  ;;  %1897 = vmatprep.subr.bf16.mxu1 %v3444_v17  ;;  %v3514_v13 = vld [vmem:[#allocation2 + $0x60c] ss:$16 sps:$4 sm:$0xff]   ;;  %v3515_v17 = vld [vmem:[#allocation2 + $0x628] ss:$16 sps:$4 sm:$0xff]  }
  0xd7   :  { %1815 = vmatprep.subr.bf16.mxu0 %v3441_v15  ;;  %v3517_v15 = vld [vmem:[#allocation2 + $0x62c] ss:$16 sps:$4 sm:$0xff]  }
  0xd9   :  { %1898 = vmatpush1.bf16.msra.mxu1 %v3442_v20  ;;  %v3518_v20 = vld [vmem:[#allocation2 + $0x648] ss:$16 sps:$4 sm:$0xff]  }
  0xda   :  { %1816 = vmatpush1.bf16.msra.mxu0 %v3439_v19  ;;  %1899 = vmatprep.subr.bf16.mxu1 %v3450_v22  ;;  %v3520_v19 = vld [vmem:[#allocation2 + $0x64c] ss:$16 sps:$4 sm:$0xff]   ;;  %v3521_v22 = vld [vmem:[#allocation2 + $0x668] ss:$16 sps:$4 sm:$0xff]  }
  0xdb   :  { %1817 = vmatprep.subr.bf16.mxu0 %v3447_v21  ;;  %v3523_v21 = vld [vmem:[#allocation2 + $0x66c] ss:$16 sps:$4 sm:$0xff]  }
  0xdd   :  { %1900 = vmatpush1.bf16.msra.mxu1 %v3448_v25  ;;  %v3524_v25 = vld [vmem:[#allocation2 + $0x688] ss:$16 sps:$4 sm:$0xff]  }
  0xde   :  { %1818 = vmatpush1.bf16.msra.mxu0 %v3445_v23  ;;  %1901 = vmatprep.subr.bf16.mxu1 %v3456_v27  ;;  %v3526_v23 = vld [vmem:[#allocation2 + $0x68c] ss:$16 sps:$4 sm:$0xff]  }
  0xdf   :  { %1819 = vmatprep.subr.bf16.mxu0 %v3453_v26  ;;  %v3529_v26 = vld [vmem:[#allocation2 + $0x6ac] ss:$16 sps:$4 sm:$0xff]  }
  0xe0   :  { %v3577_v27 = vld [vmem:[#allocation5 + $0x54] ss:$8 sps:$4 sm:$0xff]  }
  0xe1   :  { %1902 = vmatpush1.bf16.msra.mxu1 %v3454_v29 }
  0xe2   :  { %1820 = vmatpush1.bf16.msra.mxu0 %v3451_v28  ;;  %1903 = vmatprep.subr.bf16.mxu1 %v3462_v49  ;;  %v3532_v28 = vld [vmem:[#allocation2 + $0x6cc] ss:$16 sps:$4 sm:$0xff]  }
  0xe3   :  { %1821 = vmatprep.subr.bf16.mxu0 %v3459_v31 }
  0xe5   :  { %1904 = vmatpush1.bf16.msra.mxu1 %v3460_v33  ;;  %v3580_v33 = vld [vmem:[#allocation5 + $0x64] ss:$8 sps:$4 sm:$0xff]  }
  0xe6   :  { %1822 = vmatpush1.bf16.msra.mxu0 %v3457_v32  ;;  %1914 = vmatprep.subr.bf16.mxu1 %v3466_v35  ;;  %v3530_v32 = vld [vmem:[#allocation2 + $0x6c8] ss:$16 sps:$4 sm:$0xff]  }
  0xe7   :  { %2464 = vmatprep.subr.bf16.mxu0 %v3562_v40  ;;  %v3583_v40 = vld [vmem:[#allocation5 + $0x74] ss:$8 sps:$4 sm:$0xff]  }
  0xe8   :  { %1906 = vmatmul.mubr.bf16.vlgmr.msra.gmra.mrb[4].mxu1 %v3855_v18  ;;  %v3571_v18 = vld [vmem:[#allocation5 + $0x34] ss:$8 sps:$4 sm:$0xff]  }
  0xe9   :  { %1824 = vmatmul.mubr.bf16.vlgmr.msra.gmra.mrb[0].mxu0 %v3892_v37  ;;  %1915 = vmatpush1.bf16.msra.mxu1 %v3464_v36  ;;  %v3535_v36 = vld [vmem:[#allocation2 + $0x6ec] ss:$16 sps:$4 sm:$0xff]  }
  0xea   :  { %1946 = vmatprep.mubr.bf16.mxu1 %v3870_v51  ;;  %1916 = vmatprep.subr.bf16.mxu1 %v3469_v38  ;;  %v3569_v51 = vld [vmem:[#allocation5 + $0x30] ss:$8 sps:$4 sm:$0xff]   ;;  %v3578_v38 = vld [vmem:[#allocation5 + $0x60] ss:$8 sps:$4 sm:$0xff]  }
  0xeb   :  { %2465 = vmatpush1.bf16.msra.mxu0 %v3560_v39  ;;  %v3533_v39 = vld [vmem:[#allocation2 + $0x6e8] ss:$16 sps:$4 sm:$0xff]  }
  0xec   :  { %2466 = vmatprep.subr.bf16.mxu0 %v3565_v16  ;;  %v3581_v16 = vld [vmem:[#allocation5 + $0x70] ss:$8 sps:$4 sm:$0xff]  }
  0xed   :  { %1917 = vmatpush1.bf16.msra.mxu1 %v3467_v41  ;;  %v3538_v41 = vld [vmem:[#allocation2 + $0x70c] ss:$16 sps:$4 sm:$0xff]  }
  0xee   :  { %1918 = vmatprep.subr.bf16.mxu1 %v3472_v42  ;;  %v3536_v42 = vld [vmem:[#allocation2 + $0x708] ss:$16 sps:$4 sm:$0xff]  }
  0xef   :  { %2467 = vmatpush1.bf16.msra.mxu0 %v3563_v24  ;;  %v3586_v24 = vld [vmem:[#allocation5 + $0x84] ss:$8 sps:$4 sm:$0xff]  }
  0xf0   :  { %2468 = vmatprep.subr.bf16.mxu0 %v3568_v45  ;;  %v3584_v45 = vld [vmem:[#allocation5 + $0x80] ss:$8 sps:$4 sm:$0xff]  }
  0xf1   :  { %1919 = vmatpush1.bf16.msra.mxu1 %v3470_v44  ;;  %v3541_v44 = vld [vmem:[#allocation2 + $0x72c] ss:$16 sps:$4 sm:$0xff]  }
  0xf2   :  { %1920 = vmatprep.subr.bf16.mxu1 %v3475_v46  ;;  %v3539_v46 = vld [vmem:[#allocation2 + $0x728] ss:$16 sps:$4 sm:$0xff]  }
  0xf3   :  { %2469 = vmatpush1.bf16.msra.mxu0 %v3566_v47  ;;  %v3589_v47 = vld [vmem:[#allocation5 + $0x94] ss:$8 sps:$4 sm:$0xff]  }
  0xf4   :  { %2470 = vmatprep.subr.bf16.mxu0 %v3571_v18  ;;  %v3544_v18 = vld [vmem:[#allocation2 + $0x74c] ss:$16 sps:$4 sm:$0xff]  }
  0xf5   :  { %1921 = vmatpush1.bf16.msra.mxu1 %v3473_v3  ;;  %v3587_v3 = vld [vmem:[#allocation5 + $0x90] ss:$8 sps:$4 sm:$0xff]  }
  0xf6   :  { %1922 = vmatprep.subr.bf16.mxu1 %v3478_v48  ;;  %v3542_v48 = vld [vmem:[#allocation2 + $0x748] ss:$16 sps:$4 sm:$0xff]  }
  0xf7   :  { %2471 = vmatpush1.bf16.msra.mxu0 %v3569_v51  ;;  %v3592_v51 = vld [vmem:[#allocation5 + $0xa4] ss:$8 sps:$4 sm:$0xff]  }
  0xf8   :  { %2472 = vmatprep.subr.bf16.mxu0 %v3574_v50  ;;  %v3547_v50 = vld [vmem:[#allocation2 + $0x76c] ss:$16 sps:$4 sm:$0xff]  }
  0xf9   :  { %1923 = vmatpush1.bf16.msra.mxu1 %v3476_v52  ;;  %v3590_v52 = vld [vmem:[#allocation5 + $0xa0] ss:$8 sps:$4 sm:$0xff]  }
  0xfa   :  { %1924 = vmatprep.subr.bf16.mxu1 %v3481_v53  ;;  %v3545_v53 = vld [vmem:[#allocation2 + $0x768] ss:$16 sps:$4 sm:$0xff]  }
  0xfb   :  { %2473 = vmatpush1.bf16.msra.mxu0 %v3572_v54  ;;  %v3595_v54 = vld [vmem:[#allocation5 + $0xb4] ss:$8 sps:$4 sm:$0xff]  }
  0xfc   :  { %2474 = vmatprep.subr.bf16.mxu0 %v3577_v27 }
  0xfd   :  { %1925 = vmatpush1.bf16.msra.mxu1 %v3479_v55  ;;  %v3550_v55 = vld [vmem:[#allocation2 + $0x78c] ss:$16 sps:$4 sm:$0xff]  }
  0xfe   :  { %1926 = vmatprep.subr.bf16.mxu1 %v3484_v56  ;;  %v3593_v56 = vld [vmem:[#allocation5 + $0xb0] ss:$8 sps:$4 sm:$0xff]  }
 0x101   :  { %1927 = vmatpush1.bf16.msra.mxu1 %v3482_v57  ;;  %v3548_v57 = vld [vmem:[#allocation2 + $0x788] ss:$16 sps:$4 sm:$0xff]  }
 0x102   :  { %1928 = vmatprep.subr.bf16.mxu1 %v3487_v58  ;;  %v3598_v58 = vld [vmem:[#allocation5 + $0xc4] ss:$8 sps:$4 sm:$0xff]  }
 0x105   :  { %1929 = vmatpush1.bf16.msra.mxu1 %v3485_v59  ;;  %v3553_v59 = vld [vmem:[#allocation2 + $0x7ac] ss:$16 sps:$4 sm:$0xff]  }
 0x106   :  { %1930 = vmatprep.subr.bf16.mxu1 %v3490_v60  ;;  %v3596_v60 = vld [vmem:[#allocation5 + $0xc0] ss:$8 sps:$4 sm:$0xff]  }
 0x109   :  { %1931 = vmatpush1.bf16.msra.mxu1 %v3488_v61  ;;  %v3551_v61 = vld [vmem:[#allocation2 + $0x7a8] ss:$16 sps:$4 sm:$0xff]  }
 0x10a   :  { %1932 = vmatprep.subr.bf16.mxu1 %v3493_v62  ;;  %v3601_v62 = vld [vmem:[#allocation5 + $0xd4] ss:$8 sps:$4 sm:$0xff]  }
 0x10d   :  { %1933 = vmatpush1.bf16.msra.mxu1 %v3491_v63  ;;  %v3556_v63 = vld [vmem:[#allocation2 + $0x7cc] ss:$16 sps:$4 sm:$0xff]  }
 0x10e   :  { %1934 = vmatprep.subr.bf16.mxu1 %v3496_v0  ;;  %v3599_v0 = vld [vmem:[#allocation5 + $0xd0] ss:$8 sps:$4 sm:$0xff]  }
 0x111   :  { %1935 = vmatpush1.bf16.msra.mxu1 %v3494_v1  ;;  %v3554_v1 = vld [vmem:[#allocation2 + $0x7c8] ss:$16 sps:$4 sm:$0xff]  }
 0x112   :  { %1936 = vmatprep.subr.bf16.mxu1 %v3499_v2  ;;  %v3604_v2 = vld [vmem:[#allocation5 + $0xe4] ss:$8 sps:$4 sm:$0xff]  }
 0x115   :  { %1937 = vmatpush1.bf16.msra.mxu1 %v3497_v4  ;;  %v3559_v4 = vld [vmem:[#allocation2 + $0x7ec] ss:$16 sps:$4 sm:$0xff]  }
 0x116   :  { %1938 = vmatprep.subr.bf16.mxu1 %v3502_v5  ;;  %v3602_v5 = vld [vmem:[#allocation5 + $0xe0] ss:$8 sps:$4 sm:$0xff]  }
 0x119   :  { %1939 = vmatpush1.bf16.msra.mxu1 %v3500_v6  ;;  %v3557_v6 = vld [vmem:[#allocation2 + $0x7e8] ss:$16 sps:$4 sm:$0xff]  }
 0x11a   :  { %1940 = vmatprep.subr.bf16.mxu1 %v3505_v7  ;;  %v3605_v7 = vld [vmem:[#allocation5 + $0xf0] ss:$8 sps:$4 sm:$0xff]  }
 0x11d   :  { %1941 = vmatpush1.bf16.msra.mxu1 %v3503_v8  ;;  %v3607_v8 = vld [vmem:[#allocation5 + $0xf4] ss:$8 sps:$4 sm:$0xff]  }
 0x11e   :  { %1942 = vmatprep.subr.bf16.mxu1 %v3508_v9  ;;  %v3610_v9 = vld [vmem:[#allocation5 + $0x104] ss:$8 sps:$4 sm:$0xff]  }
 0x121   :  { %1943 = vmatpush1.bf16.msra.mxu1 %v3506_v10  ;;  %v370_v10 = vsub.s32 0, %v3840_v43 }
 0x122   :  { %1944 = vmatprep.subr.bf16.mxu1 %v3511_v11  ;;  %v3908_v11 = vld [vmem:[%s3995_s2] sm:$0xf] }
 0x125   :  { %1945 = vmatpush1.bf16.msra.mxu1 %v3509_v12  ;;  %v374_v12 = vsub.s32 1, %v3840_v43 }
 0x126   :  { %1955 = vmatprep.subr.bf16.mxu1 %v3514_v13  ;;  %v371_v13 = vrot.slane %v3908_v11, %v370_v10 }
 0x128   :  { %1947 = vmatmul.mubr.bf16.vlgmr.msra.gmra.mrb[4].mxu1 %v3882_v30  ;;  %v3527_v30 = vld [vmem:[#allocation2 + $0x6a8] ss:$16 sps:$4 sm:$0xff]  }
 0x129   :  { %1956 = vmatpush1.bf16.msra.mxu1 %v3512_v14  ;;  %1987 = vmatprep.mubr.bf16.mxu1 %v3884_v34  ;;  %v3575_v34 = vld [vmem:[#allocation5 + $0x50] ss:$8 sps:$4 sm:$0xff]   ;;  %v375_v14 = vrot.slane %v3908_v11, %v374_v12 }
 0x12a   :  { %1957 = vmatprep.subr.bf16.mxu1 %v3517_v15  ;;  %2475 = vmatpush1.bf16.msra.mxu0 %v3575_v34 }
 0x12b   :  { %2476 = vmatprep.subr.bf16.mxu0 %v3580_v33 }
 0x12d   :  { %1958 = vmatpush1.bf16.msra.mxu1 %v3515_v17 }
 0x12e   :  { %1959 = vmatprep.subr.bf16.mxu1 %v3520_v19  ;;  %2477 = vmatpush1.bf16.msra.mxu0 %v3578_v38 }
 0x12f   :  { %2478 = vmatprep.subr.bf16.mxu0 %v3583_v40 }
 0x131   :  { %1960 = vmatpush1.bf16.msra.mxu1 %v3518_v20 }
 0x132   :  { %1961 = vmatprep.subr.bf16.mxu1 %v3523_v21  ;;  %2479 = vmatpush1.bf16.msra.mxu0 %v3581_v16 }
 0x133   :  { %2480 = vmatprep.subr.bf16.mxu0 %v3586_v24 }
 0x135   :  { %1962 = vmatpush1.bf16.msra.mxu1 %v3521_v22 }
 0x136   :  { %1963 = vmatprep.subr.bf16.mxu1 %v3526_v23  ;;  %2481 = vmatpush1.bf16.msra.mxu0 %v3584_v45 }
 0x137   :  { %2482 = vmatprep.subr.bf16.mxu0 %v3589_v47 }
 0x139   :  { %1964 = vmatpush1.bf16.msra.mxu1 %v3524_v25 }
 0x13a   :  { %1965 = vmatprep.subr.bf16.mxu1 %v3529_v26  ;;  %2483 = vmatpush1.bf16.msra.mxu0 %v3587_v3 }
 0x13b   :  { %v3899_v29 = vpop.f32.mrb[0].mxu1  ;;  %2484 = vmatprep.subr.bf16.mxu0 %v3592_v51 }
 0x13c   :  { %v3901_v31 = vpop.f32.mrb[1].mxu1 }
 0x13d   :  { %v1706_v49 = vpop.f32.mrb[2].mxu1  ;;  %1966 = vmatpush1.bf16.msra.mxu1 %v3527_v30  ;;  %v1705_v15 = vadd.f32 %v3901_v31, %v375_v14  ;;  %v3637_v14 = vld [vmem:[#allocation5 + $0x194] ss:$8 sps:$4 sm:$0xff]  }
 0x13e   :  { %v1707_v35 = vpop.f32.mrb[3].mxu1  ;;  %1967 = vmatprep.subr.bf16.mxu1 %v3532_v28  ;;  %2485 = vmatpush1.bf16.msra.mxu0 %v3590_v52 }
 0x13f   :  { %2486 = vmatprep.subr.bf16.mxu0 %v3595_v54 }
 0x141   :  { %1968 = vmatpush1.bf16.msra.mxu1 %v3530_v32 }
 0x142   :  { %1969 = vmatprep.subr.bf16.mxu1 %v3535_v36  ;;  %2487 = vmatpush1.bf16.msra.mxu0 %v3593_v56  ;;  %v3608_v56 = vld [vmem:[#allocation5 + $0x100] ss:$8 sps:$4 sm:$0xff]  }
 0x143   :  { %2488 = vmatprep.subr.bf16.mxu0 %v3598_v58  ;;  %v3613_v58 = vld [vmem:[#allocation5 + $0x114] ss:$8 sps:$4 sm:$0xff]  }
 0x145   :  { %1970 = vmatpush1.bf16.msra.mxu1 %v3533_v39 }
 0x146   :  { %1971 = vmatprep.subr.bf16.mxu1 %v3538_v41  ;;  %2489 = vmatpush1.bf16.msra.mxu0 %v3596_v60  ;;  %v3616_v60 = vld [vmem:[#allocation5 + $0x124] ss:$8 sps:$4 sm:$0xff]  }
 0x147   :  { %2490 = vmatprep.subr.bf16.mxu0 %v3601_v62  ;;  %v3619_v62 = vld [vmem:[#allocation5 + $0x134] ss:$8 sps:$4 sm:$0xff]  }
 0x149   :  { %1972 = vmatpush1.bf16.msra.mxu1 %v3536_v42 }
 0x14a   :  { %1973 = vmatprep.subr.bf16.mxu1 %v3541_v44  ;;  %2491 = vmatpush1.bf16.msra.mxu0 %v3599_v0  ;;  %v3622_v0 = vld [vmem:[#allocation5 + $0x144] ss:$8 sps:$4 sm:$0xff]  }
 0x14b   :  { %2492 = vmatprep.subr.bf16.mxu0 %v3604_v2  ;;  %v3625_v2 = vld [vmem:[#allocation5 + $0x154] ss:$8 sps:$4 sm:$0xff]  }
 0x14d   :  { %1974 = vmatpush1.bf16.msra.mxu1 %v3539_v46 }
 0x14e   :  { %1975 = vmatprep.subr.bf16.mxu1 %v3544_v18  ;;  %2493 = vmatpush1.bf16.msra.mxu0 %v3602_v5  ;;  %v3628_v5 = vld [vmem:[#allocation5 + $0x164] ss:$8 sps:$4 sm:$0xff]  }
 0x14f   :  { %2494 = vmatprep.subr.bf16.mxu0 %v3607_v8  ;;  %v3629_v8 = vld [vmem:[#allocation5 + $0x170] ss:$8 sps:$4 sm:$0xff]  }
 0x151   :  { %1976 = vmatpush1.bf16.msra.mxu1 %v3542_v48 }
 0x152   :  { %1977 = vmatprep.subr.bf16.mxu1 %v3547_v50  ;;  %2495 = vmatpush1.bf16.msra.mxu0 %v3605_v7  ;;  %v3631_v7 = vld [vmem:[#allocation5 + $0x174] ss:$8 sps:$4 sm:$0xff]  }
 0x153   :  { %2505 = vmatprep.subr.bf16.mxu0 %v3610_v9  ;;  %v3634_v9 = vld [vmem:[#allocation5 + $0x184] ss:$8 sps:$4 sm:$0xff]  }
 0x155   :  { %1978 = vmatpush1.bf16.msra.mxu1 %v3545_v53 }
 0x156   :  { %1979 = vmatprep.subr.bf16.mxu1 %v3550_v55 }
 0x159   :  { %1980 = vmatpush1.bf16.msra.mxu1 %v3548_v57 }
 0x15a   :  { %1981 = vmatprep.subr.bf16.mxu1 %v3553_v59  ;;  %v3611_v59 = vld [vmem:[#allocation5 + $0x110] ss:$8 sps:$4 sm:$0xff]  }
 0x15d   :  { %1982 = vmatpush1.bf16.msra.mxu1 %v3551_v61  ;;  %v3614_v61 = vld [vmem:[#allocation5 + $0x120] ss:$8 sps:$4 sm:$0xff]  }
 0x15e   :  { %1983 = vmatprep.subr.bf16.mxu1 %v3556_v63  ;;  %v3617_v63 = vld [vmem:[#allocation5 + $0x130] ss:$8 sps:$4 sm:$0xff]  }
 0x161   :  { %1984 = vmatpush1.bf16.msra.mxu1 %v3554_v1  ;;  %v3620_v1 = vld [vmem:[#allocation5 + $0x140] ss:$8 sps:$4 sm:$0xff]  }
 0x162   :  { %1985 = vmatprep.subr.bf16.mxu1 %v3559_v4  ;;  %v3623_v4 = vld [vmem:[#allocation5 + $0x150] ss:$8 sps:$4 sm:$0xff]  }
 0x165   :  { %1986 = vmatpush1.bf16.msra.mxu1 %v3557_v6  ;;  %v3626_v6 = vld [vmem:[#allocation5 + $0x160] ss:$8 sps:$4 sm:$0xff]  }
 0x168   :  { %1988 = vmatmul.mubr.bf16.vlgmr.msra.gmra.mrb[4].mxu1 %v3892_v37  ;;  %v1703_v37 = vadd.f32 %v3899_v29, %v371_v13  ;;  %v3632_v13 = vld [vmem:[#allocation5 + $0x180] ss:$8 sps:$4 sm:$0xff]  }
 0x1bc   :  { %v1825_v17 = vpop.f32.mrb[0].mxu0 }
 0x1bd   :  { %v3135_v19 = vadd.f32 %v1825_v17, %v1703_v37  ;;  %v1827_v20 = vpop.f32.mrb[1].mxu0  ;;  %v3635_v37 = vld [vmem:[#allocation5 + $0x190] ss:$8 sps:$4 sm:$0xff]   ;;  %v3638_v17 = vld [vmem:[#allocation5 + $0x1a0] ss:$8 sps:$4 sm:$0xff]  }
 0x1be   :  { %v3137_v21 = vadd.f32 %v1827_v20, %v1705_v15  ;;  %v1829_v22 = vpop.f32.mrb[2].mxu0  ;;  %v3640_v15 = vld [vmem:[#allocation5 + $0x1a4] ss:$8 sps:$4 sm:$0xff]   ;;  %v3641_v20 = vld [vmem:[#allocation5 + $0x1b0] ss:$8 sps:$4 sm:$0xff]  }
 0x1bf   :  { %v1996_v23 = vand.u32 2147483647, %v3135_v19  ;;  %v1830_v25 = vpop.f32.mrb[3].mxu0  ;;  %vm2012_vm0 = vcmp.ge.f32.partialorder %v3135_v19, 0.0  ;;  %v3644_v22 = vld [vmem:[#allocation5 + $0x1c0] ss:$8 sps:$4 sm:$0xff]  }
 0x1c0   :  { %v1997_v26 = vand.u32 2147483647, %v3137_v21  ;;  %vm2013_vm1 = vcmp.ge.f32.partialorder %v3137_v21, 0.0  ;;  %v3647_v25 = vld [vmem:[#allocation5 + $0x1d0] ss:$8 sps:$4 sm:$0xff]  }
 0x1c1   :  { %v2000_v30 = vsub.f32 0.0, %v1996_v23  ;;  %v3649_v23 = vld [vmem:[#allocation5 + $0x1d4] ss:$8 sps:$4 sm:$0xff]  }
 0x1c2   :  { %v2001_v27 = vsub.f32 0.0, %v1997_v26  ;;  %v3652_v26 = vld [vmem:[#allocation5 + $0x1e4] ss:$8 sps:$4 sm:$0xff]  }
 0x1c3   :  { %v2004_v28 = vmul.f32 1.442695, %v2000_v30  ;;  %v3650_v30 = vld [vmem:[#allocation5 + $0x1e0] ss:$8 sps:$4 sm:$0xff]  }
 0x1c4   :  { %v2006_v34 = vmul.f32 1.442695, %v2001_v27  ;;  %v3655_v27 = vld [vmem:[#allocation5 + $0x1f4] ss:$8 sps:$4 sm:$0xff]  }
 0x1c5   :  { %3672 = vpow2.f32 %v2004_v28  ;;  %v3653_v28 = vld [vmem:[#allocation5 + $0x1f0] ss:$8 sps:$4 sm:$0xff]  }
 0x1c6   :  { %3674 = vpow2.f32 %v2006_v34  ;;  %v378_v34 = vsub.s32 2, %v3840_v43 }
 0x1cf   :  { %v3673_v49 = vpop.eup %3672 }
 0x1d0   :  { %v3675_v32 = vpop.eup %3674  ;;  %v2016_v33 = vmul.f32 2.0, %v3673_v49  ;;  %v2024_v29 = vadd.f32 2.0, %v3673_v49 }
 0x1d1   :  { %v2017_v35 = vmul.f32 2.0, %v3675_v32  ;;  %v2025_v31 = vadd.f32 2.0, %v3675_v32 }
 0x1d2   :  { %v2020_v36 = vadd.f32 1.0, %v2016_v33  ;;  %v2028_v38 = vmul.f32 %v3673_v49, %v2024_v29  ;;  %v2036_v39 = vmul.f32 %v3673_v49, %v2016_v33  ;;  %v382_v49 = vsub.s32 3, %v3840_v43 }
 0x1d3   :  { %v2021_v40 = vadd.f32 1.0, %v2017_v35  ;;  %v2029_v41 = vmul.f32 %v3675_v32, %v2025_v31  ;;  %v2037_v16 = vmul.f32 %v3675_v32, %v2017_v35  ;;  %v379_v32 = vrot.slane %v3908_v11, %v378_v34 }
 0x1d4   :  { %v2040_v42 = vadd.f32 %v2036_v39, %v2020_v36  ;;  %v2044_v24 = vadd.f32 2.0, %v2028_v38  ;;  %v2032_v18 = vsel %vm2012_vm0, %v2020_v36, %v2028_v38  ;;  %v383_v33 = vrot.slane %v3908_v11, %v382_v49 }
 0x1d5   :  { %v2041_v44 = vadd.f32 %v2037_v16, %v2021_v40  ;;  %v2045_v45 = vadd.f32 2.0, %v2029_v41  ;;  %v2033_v3 = vsel %vm2013_vm1, %v2021_v40, %v2029_v41  ;;  %v2052_v48 = vmul.f32 %v3135_v19, %v2032_v18  ;;  %v3643_v19 = vld [vmem:[#allocation5 + $0x1b4] ss:$8 sps:$4 sm:$0xff]  }
 0x1d6   :  { %v2048_v46 = vsel %vm2012_vm0, %v2040_v42, %v2044_v24  ;;  %v2053_v50 = vmul.f32 %v3137_v21, %v2033_v3  ;;  %v3646_v21 = vld [vmem:[#allocation5 + $0x1c4] ss:$8 sps:$4 sm:$0xff]  }
 0x1d7   :  { %3676 = vrcp.f32 %v2048_v46  ;;  %v2049_v47 = vsel %vm2013_vm1, %v2041_v44, %v2045_v45 }
 0x1d8   :  { %3678 = vrcp.f32 %v2049_v47 }
 0x1e1   :  { %v3677_v51 = vpop.eup %3676 }
 0x1e2   :  { %v3679_v52 = vpop.eup %3678  ;;  %v2060_v53 = vmul.f32 %v3677_v51, %v2052_v48 }
 0x1e3   :  { %v2061_v54 = vmul.f32 %v3679_v52, %v2053_v50 }
 0x1e4   :  { %v2064_v57 = vpack.c.bf16 %v2060_v53, %v2060_v53 }
 0x1e5   :  { %v2065_v55 = vpack.c.bf16 %v2061_v54, %v2061_v54 }
 0x1e7   :  { %2496 = vmatprep.mubr.bf16.mxu0 %v2065_v55 }
 0x1e8   :  { %2497 = vmatmul.mubr.bf16.vlgmr.msra.gmra.mrb[4].mxu0 %v2064_v57 }
 0x1e9   :  { %2506 = vmatpush1.bf16.msra.mxu0 %v3608_v56 }
 0x1ea   :  { %2507 = vmatprep.subr.bf16.mxu0 %v3613_v58 }
 0x1ed   :  { %2508 = vmatpush1.bf16.msra.mxu0 %v3611_v59 }
 0x1ee   :  { %2509 = vmatprep.subr.bf16.mxu0 %v3616_v60 }
 0x1f1   :  { %2510 = vmatpush1.bf16.msra.mxu0 %v3614_v61 }
 0x1f2   :  { %2511 = vmatprep.subr.bf16.mxu0 %v3619_v62 }
 0x1f5   :  { %2512 = vmatpush1.bf16.msra.mxu0 %v3617_v63 }
 0x1f6   :  { %2513 = vmatprep.subr.bf16.mxu0 %v3622_v0 }
 0x1f9   :  { %2514 = vmatpush1.bf16.msra.mxu0 %v3620_v1 }
 0x1fa   :  { %2515 = vmatprep.subr.bf16.mxu0 %v3625_v2 }
 0x1fd   :  { %2516 = vmatpush1.bf16.msra.mxu0 %v3623_v4 }
 0x1fe   :  { %2517 = vmatprep.subr.bf16.mxu0 %v3628_v5 }
 0x201   :  { %2518 = vmatpush1.bf16.msra.mxu0 %v3626_v6 }
 0x202   :  { %2519 = vmatprep.subr.bf16.mxu0 %v3631_v7 }
 0x205   :  { %2520 = vmatpush1.bf16.msra.mxu0 %v3629_v8  ;;  %v3656_v8 = vld [vmem:[%s3998_s5 + $0x40] sm:$0xff]  }
 0x206   :  { %2521 = vmatprep.subr.bf16.mxu0 %v3634_v9  ;;  %v3657_v9 = vld [vmem:[%s3998_s5] sm:$0xff]   ;;  %3112 = vmatprep.subr.bf16.mxu1 %v3656_v8 }
 0x207   :  { %3113 = vmatpush3.bf16.msra.mxu1 %v3657_v9 }
 0x209   :  { %2522 = vmatpush1.bf16.msra.mxu0 %v3632_v13  ;;  %v3658_v13 = vld [vmem:[%s3998_s5 + $0x48] sm:$0xff]  }
 0x20a   :  { %2523 = vmatprep.subr.bf16.mxu0 %v3637_v14  ;;  %v3659_v14 = vld [vmem:[%s3998_s5 + $0x8] sm:$0xff]   ;;  %3114 = vmatprep.subr.bf16.mxu1 %v3658_v13 }
 0x20b   :  { %3115 = vmatpush3.bf16.msra.mxu1 %v3659_v14 }
 0x20d   :  { %2524 = vmatpush1.bf16.msra.mxu0 %v3635_v37  ;;  %v3660_v37 = vld [vmem:[%s3998_s5 + $0x50] sm:$0xff]  }
 0x20e   :  { %2525 = vmatprep.subr.bf16.mxu0 %v3640_v15  ;;  %v3661_v15 = vld [vmem:[%s3998_s5 + $0x10] sm:$0xff]   ;;  %3116 = vmatprep.subr.bf16.mxu1 %v3660_v37 }
 0x20f   :  { %3117 = vmatpush3.bf16.msra.mxu1 %v3661_v15 }
 0x211   :  { %2526 = vmatpush1.bf16.msra.mxu0 %v3638_v17  ;;  %v3662_v17 = vld [vmem:[%s3998_s5 + $0x58] sm:$0xff]  }
 0x212   :  { %2527 = vmatprep.subr.bf16.mxu0 %v3643_v19  ;;  %v3663_v19 = vld [vmem:[%s3998_s5 + $0x18] sm:$0xff]   ;;  %3118 = vmatprep.subr.bf16.mxu1 %v3662_v17 }
 0x213   :  { %3119 = vmatpush3.bf16.msra.mxu1 %v3663_v19 }
 0x215   :  { %2528 = vmatpush1.bf16.msra.mxu0 %v3641_v20  ;;  %v3664_v20 = vld [vmem:[%s3998_s5 + $0x60] sm:$0xff]  }
 0x216   :  { %2529 = vmatprep.subr.bf16.mxu0 %v3646_v21  ;;  %v3665_v21 = vld [vmem:[%s3998_s5 + $0x20] sm:$0xff]   ;;  %3120 = vmatprep.subr.bf16.mxu1 %v3664_v20 }
 0x217   :  { %3121 = vmatpush3.bf16.msra.mxu1 %v3665_v21 }
 0x219   :  { %2530 = vmatpush1.bf16.msra.mxu0 %v3644_v22  ;;  %v3666_v22 = vld [vmem:[%s3998_s5 + $0x68] sm:$0xff]  }
 0x21a   :  { %2531 = vmatprep.subr.bf16.mxu0 %v3649_v23  ;;  %v3667_v23 = vld [vmem:[%s3998_s5 + $0x28] sm:$0xff]   ;;  %3122 = vmatprep.subr.bf16.mxu1 %v3666_v22 }
 0x21b   :  { %3123 = vmatpush3.bf16.msra.mxu1 %v3667_v23 }
 0x21d   :  { %2532 = vmatpush1.bf16.msra.mxu0 %v3647_v25  ;;  %v3668_v25 = vld [vmem:[%s3998_s5 + $0x70] sm:$0xff]  }
 0x21e   :  { %2533 = vmatprep.subr.bf16.mxu0 %v3652_v26  ;;  %v3669_v26 = vld [vmem:[%s3998_s5 + $0x30] sm:$0xff]   ;;  %3124 = vmatprep.subr.bf16.mxu1 %v3668_v25 }
 0x21f   :  { %3125 = vmatpush3.bf16.msra.mxu1 %v3669_v26 }
 0x221   :  { %2534 = vmatpush1.bf16.msra.mxu0 %v3650_v30  ;;  %v3670_v30 = vld [vmem:[%s3998_s5 + $0x78] sm:$0xff]  }
 0x222   :  { %2535 = vmatprep.subr.bf16.mxu0 %v3655_v27  ;;  %v3671_v27 = vld [vmem:[%s3998_s5 + $0x38] sm:$0xff]   ;;  %3126 = vmatprep.subr.bf16.mxu1 %v3670_v30 }
 0x223   :  { %3127 = vmatpush3.bf16.msra.mxu1 %v3671_v27 }
 0x225   :  { %2536 = vmatpush1.bf16.msra.mxu0 %v3653_v28  ;;  %v2132_v28 = vld [vmem:[%s3997_s4] sm:$0x3] }
 0x226   :  { %v2137_v34 = vrot.slane %v2132_v28, %v370_v10  ;;  %v2141_v49 = vrot.slane %v2132_v28, %v374_v12 }
 0x23b   :  { %v1989_v29 = vpop.f32.mrb[4].mxu1 }
 0x23c   :  { %v3138_v35 = vadd.f32 %v1989_v29, %v379_v32  ;;  %v1991_v31 = vpop.f32.mrb[5].mxu1 }
 0x23d   :  { %v3139_v36 = vadd.f32 %v1991_v31, %v383_v33  ;;  %v1993_v38 = vpop.f32.mrb[6].mxu1 }
 0x23e   :  { %v1998_v39 = vand.u32 2147483647, %v3138_v35  ;;  %v1994_v40 = vpop.f32.mrb[7].mxu1  ;;  %vm2014_vm2 = vcmp.ge.f32.partialorder %v3138_v35, 0.0 }
 0x23f   :  { %v1999_v41 = vand.u32 2147483647, %v3139_v36  ;;  %vm2015_vm3 = vcmp.ge.f32.partialorder %v3139_v36, 0.0 }
 0x240   :  { %v2002_v16 = vsub.f32 0.0, %v1998_v39 }
 0x241   :  { %v2003_v42 = vsub.f32 0.0, %v1999_v41 }
 0x242   :  { %v2008_v24 = vmul.f32 1.442695, %v2002_v16 }
 0x243   :  { %v2010_v44 = vmul.f32 1.442695, %v2003_v42 }
 0x244   :  { %3680 = vpow2.f32 %v2008_v24 }
 0x245   :  { %3682 = vpow2.f32 %v2010_v44 }
 0x24e   :  { %v3681_v45 = vpop.eup %3680 }
 0x24f   :  { %v3683_v46 = vpop.eup %3682  ;;  %v2018_v47 = vmul.f32 2.0, %v3681_v45  ;;  %v2026_v18 = vadd.f32 2.0, %v3681_v45 }
 0x250   :  { %v2019_v3 = vmul.f32 2.0, %v3683_v46  ;;  %v2027_v11 = vadd.f32 2.0, %v3683_v46 }
 0x251   :  { %v2022_v48 = vadd.f32 1.0, %v2018_v47  ;;  %v2030_v51 = vmul.f32 %v3681_v45, %v2026_v18  ;;  %v2038_v50 = vmul.f32 %v3681_v45, %v2018_v47 }
 0x252   :  { %v2023_v52 = vadd.f32 1.0, %v2019_v3  ;;  %v2031_v53 = vmul.f32 %v3683_v46, %v2027_v11  ;;  %v2039_v54 = vmul.f32 %v3683_v46, %v2019_v3 }
 0x253   :  { %v2042_v55 = vadd.f32 %v2038_v50, %v2022_v48  ;;  %v2046_v56 = vadd.f32 2.0, %v2030_v51  ;;  %v2034_v61 = vsel %vm2014_vm2, %v2022_v48, %v2030_v51 }
 0x254   :  { %v2043_v57 = vadd.f32 %v2039_v54, %v2023_v52  ;;  %v2047_v58 = vadd.f32 2.0, %v2031_v53  ;;  %v2035_v62 = vsel %vm2015_vm3, %v2023_v52, %v2031_v53  ;;  %v2054_v63 = vmul.f32 %v3138_v35, %v2034_v61 }
 0x255   :  { %v2050_v59 = vsel %vm2014_vm2, %v2042_v55, %v2046_v56  ;;  %v2055_v1 = vmul.f32 %v3139_v36, %v2035_v62 }
 0x256   :  { %3684 = vrcp.f32 %v2050_v59  ;;  %v2051_v60 = vsel %vm2015_vm3, %v2043_v57, %v2047_v58 }
 0x257   :  { %3686 = vrcp.f32 %v2051_v60 }
 0x260   :  { %v3685_v0 = vpop.eup %3684 }
 0x261   :  { %v3687_v2 = vpop.eup %3686  ;;  %v2062_v4 = vmul.f32 %v3685_v0, %v2054_v63 }
 0x262   :  { %v2063_v5 = vmul.f32 %v3687_v2, %v2055_v1 }
 0x263   :  { %v2066_v7 = vpack.c.bf16 %v2062_v4, %v2062_v4  ;;  %v3095_v4 = vld [vmem:[%s3999_s6] ss:$0 sm:$0xff] }
 0x264   :  { %v2067_v6 = vpack.c.bf16 %v2063_v5, %v2063_v5 }
 0x266   :  { %2537 = vmatprep.mubr.bf16.mxu0 %v2067_v6 }
 0x267   :  { %2538 = vmatmul.mubr.bf16.vlgmr.msra.gmra.mrb[4].mxu0 %v2066_v7 }
 0x33a   :  { %v2539_v32 = vpop.f32.mrb[4].mxu0 }
 0x33b   :  { %v3140_v33 = vadd.f32 %v2539_v32, %v2137_v34  ;;  %v2541_v29 = vpop.f32.mrb[5].mxu0 }
 0x33c   :  { %v3141_v35 = vadd.f32 %v2541_v29, %v2141_v49  ;;  %v2543_v31 = vpop.f32.mrb[6].mxu0 }
 0x33d   :  { %v2546_v36 = vand.u32 2147483647, %v3140_v33  ;;  %v2544_v38 = vpop.f32.mrb[7].mxu0  ;;  %vm2554_vm4 = vcmp.ge.f32.partialorder %v3140_v33, 0.0 }
 0x33e   :  { %v2547_v39 = vand.u32 2147483647, %v3141_v35  ;;  %vm2555_vm5 = vcmp.ge.f32.partialorder %v3141_v35, 0.0 }
 0x33f   :  { %v2548_v40 = vsub.f32 0.0, %v2546_v36 }
 0x340   :  { %v2549_v41 = vsub.f32 0.0, %v2547_v39 }
 0x341   :  { %v2550_v16 = vmul.f32 1.442695, %v2548_v40 }
 0x342   :  { %v2552_v42 = vmul.f32 1.442695, %v2549_v41 }
 0x343   :  { %3688 = vpow2.f32 %v2550_v16 }
 0x344   :  { %3690 = vpow2.f32 %v2552_v42 }
 0x34d   :  { %v3689_v24 = vpop.eup %3688 }
 0x34e   :  { %v3691_v44 = vpop.eup %3690  ;;  %v2556_v10 = vmul.f32 2.0, %v3689_v24  ;;  %v2560_v45 = vadd.f32 2.0, %v3689_v24 }
 0x34f   :  { %v2557_v43 = vmul.f32 2.0, %v3691_v44  ;;  %v2561_v12 = vadd.f32 2.0, %v3691_v44 }
 0x350   :  { %v2558_v46 = vadd.f32 1.0, %v2556_v10  ;;  %v2562_v47 = vmul.f32 %v3689_v24, %v2560_v45  ;;  %v2566_v18 = vmul.f32 %v3689_v24, %v2556_v10 }
 0x351   :  { %v2559_v3 = vadd.f32 1.0, %v2557_v43  ;;  %v2563_v11 = vmul.f32 %v3691_v44, %v2561_v12  ;;  %v2567_v48 = vmul.f32 %v3691_v44, %v2557_v43 }
 0x352   :  { %v2568_v51 = vadd.f32 %v2566_v18, %v2558_v46  ;;  %v2570_v50 = vadd.f32 2.0, %v2562_v47  ;;  %v2564_v56 = vsel %vm2554_vm4, %v2558_v46, %v2562_v47 }
 0x353   :  { %v2569_v52 = vadd.f32 %v2567_v48, %v2559_v3  ;;  %v2571_v53 = vadd.f32 2.0, %v2563_v11  ;;  %v2565_v57 = vsel %vm2555_vm5, %v2559_v3, %v2563_v11  ;;  %v2574_v58 = vmul.f32 %v3140_v33, %v2564_v56 }
 0x354   :  { %v2572_v54 = vsel %vm2554_vm4, %v2568_v51, %v2570_v50  ;;  %v2575_v60 = vmul.f32 %v3141_v35, %v2565_v57 }
 0x355   :  { %3692 = vrcp.f32 %v2572_v54  ;;  %v2573_v55 = vsel %vm2555_vm5, %v2569_v52, %v2571_v53 }
 0x356   :  { %3694 = vrcp.f32 %v2573_v55 }
 0x35f   :  { %v3693_v59 = vpop.eup %3692 }
 0x360   :  { %v3695_v61 = vpop.eup %3694  ;;  %v2578_v62 = vmul.f32 %v3693_v59, %v2574_v58 }
 0x361   :  { %v2579_v63 = vmul.f32 %v3695_v61, %v2575_v60 }
 0x362   :  { %v2580_v1 = vpack.c.bf16 %v2578_v62, %v2578_v62 }
 0x363   :  { %v2581_v0 = vpack.c.bf16 %v2579_v63, %v2579_v63 }
 0x365   :  { %2749 = vmatprep.mubr.bf16.mxu1 %v2581_v0 }
 0x366   :  { %2750 = vmatmul.mubr.bf16.vlgmr.msra.gmra.mrb[8].mxu1 %v2580_v1 }
 0x439   :  { %v3128_v2 = vpop.f32.mrb[8].mxu1 }
 0x43a   :  { %v3129_v5 = vpop.f32.mrb[9].mxu1 }
 0x43b   :  { %v3130_v6 = vadd.f32 %v3129_v5, %v3128_v2  ;;  %v3131_v7 = vpop.f32.mrb[10].mxu1 }
 0x43c   :  { %v3132_v8 = vpop.f32.mrb[11].mxu1 }
 0x43d   :  { %v2752_v9 = vadd.f32 %v3130_v6, %v3095_v4 }
 0x43f   :  { %2758 = vst.msk [vmem:[#allocation7] sm:$0x3] %vm2757_vm6, %v2752_v9 }
 0x440   :  { %3751 = shalt.err (!%p3748_p6)
}
 0x441   :  { %s3752_s6 = scalar_lea.hbm %s4000_s7, 32 }
 0x442   :  { %p3753_p7 = scmp.ne.s32.totalorder %s4000_s7, %s3752_s6  ;;  %p3756_p8 = scmp.lt.u32.totalorder %s3752_s6, %s4000_s7 }
 0x444   :  { %p3758_p9 = pnand %p3756_p8, %p3753_p7 }
 0x446   :  { %3761 = shalt.err (!%p3758_p9)
}
 0x447   :  { %2768 = dma.vmem_to_hbm [thread:$0]  %s2766_s16, 32, %s4000_s7, [#allocation4]  }
 0x448   :  { %3766 = dma.done.wait [#allocation4], 32  }
 0x449   :  { %3767 = vsyncadd [#allocation4], 4294967264 }
 0x44a   :  { %2772 = vsyncpa [#allocation3], 1 }
 0x44b   :  { %2773 = vsyncpa [#allocation6], 1 }
 0x44c   :  { %2774 = vsyncpa [#allocation4], 1 }

</bundles_post_ra>
